<compile_context>
chip_gen: v7x
topology: tpu7x:2x2x1
jax: 0.10.0
libtpu: 0.0.40
codegen_flags: <defaults>
</compile_context>

<pallas_src>
import functools

import jax
import jax.numpy as jnp
from jax.experimental import pallas as pl


# ----------------------------------------------------------------------------
# Weight/gate re-layout helpers (run once, outside the kernel, in XLA).
# Combined gate layout along the last axis (8H wide):
#   [ i_f | i_b | f_f | f_b | g_f | g_b | o_f | o_b ]   (each block H wide)
# so a cell over the combined (B, 2H) state uses contiguous 2H-wide gate slices.
# ----------------------------------------------------------------------------
def _interleave_cols(wf, wb):
    """(R,4H),(R,4H) -> (R,8H) with fwd/bwd gate blocks interleaved."""
    r, g4 = wf.shape
    h = g4 // 4
    return jnp.stack([wf.reshape(r, 4, h), wb.reshape(r, 4, h)], axis=2).reshape(r, 8 * h)


def _interleave_gates_tb(gf, gb):
    """(T,B,4H),(T,B,4H) -> (T,B,8H) with fwd/bwd gate blocks interleaved."""
    t, b, g4 = gf.shape
    h = g4 // 4
    return jnp.stack([gf.reshape(t, b, 4, h), gb.reshape(t, b, 4, h)], axis=3).reshape(t, b, 8 * h)


# ----------------------------------------------------------------------------
# Fused kernel: layer-1 fwd+bwd recurrence -> layer-2 input projection ->
# layer-2 fwd+bwd recurrence -> MLP head.  No grid; everything VMEM resident.
# ----------------------------------------------------------------------------
def _fused_bilstm_head_kernel(
    gx1_ref,                 # (T, B, 8H)   hoisted layer-1 x@W_ih + b, fwd/bwd interleaved
    whh1_ref,                # (2H, 8H)     layer-1 combined recurrent weight
    m1_ref, m2_ref,          # (2H, 8H)     layer-2 input-proj weights vs hc1[s] / hc1[T-1-s]
    b2_ref,                  # (1, 8H)      layer-2 combined bias
    whh2_ref,                # (2H, 8H)     layer-2 combined recurrent weight
    w1_ref, bh1_ref,         # (2H, 64), (1, 64)   head Linear-1
    w2_ref, bh2_ref,         # (64, 5),  (1, 5)    head Linear-2
    out_ref,                 # (B, 5)
    *, T, B, H,
):
    f32 = jnp.float32
    H2 = 2 * H

    def cell(gates, c):
        # gates: (B, 8H) = [i_f,i_b | f_f,f_b | g_f,g_b | o_f,o_b]; c: (B, 2H)
        i = jax.nn.sigmoid(gates[:, 0 * H2:1 * H2])
        f = jax.nn.sigmoid(gates[:, 1 * H2:2 * H2])
        g = jnp.tanh(gates[:, 2 * H2:3 * H2])
        o = jax.nn.sigmoid(gates[:, 3 * H2:4 * H2])
        c = f * c + i * g
        return o * jnp.tanh(c), c

    zeros = jnp.zeros((B, H2), f32)

    # ---- layer 1: fwd & bwd fused (bwd runs over reversed time inside the same state) ----
    whh1 = whh1_ref[...]
    h, c = zeros, zeros
    hc1 = []                       # hc1[s] = [ h1_fwd(t=s) | h1_bwd(t=T-1-s) ]
    for s in range(T):
        h, c = cell(gx1_ref[s] + jnp.dot(h, whh1, preferred_element_type=f32), c)
        hc1.append(h)

    # ---- layer-2 input projections, batched over the whole sequence (2 matmuls) ----
    a = jnp.concatenate(hc1, axis=0)                              # (T*B, 2H)
    g1 = jnp.dot(a, m1_ref[...], preferred_element_type=f32)      # (T*B, 8H)
    g2 = jnp.dot(a, m2_ref[...], preferred_element_type=f32)      # (T*B, 8H)
    b2 = b2_ref[...]

    # ---- layer 2: fwd & bwd fused; only the final combined state is needed ----
    whh2 = whh2_ref[...]
    h, c = zeros, zeros
    for s in range(T):
        gx = g1[s * B:(s + 1) * B, :] + g2[(T - 1 - s) * B:(T - s) * B, :] + b2
        h, c = cell(gx + jnp.dot(h, whh2, preferred_element_type=f32), c)
    # h == [ h2_fwd_last | h2_bwd_last ]  ==  torch.cat((h[-2], h[-1]), dim=1)

    # ---- MLP head: Linear(2H,64) -> ReLU -> Linear(64,5) ----
    hid = jnp.dot(h, w1_ref[...], preferred_element_type=f32) + bh1_ref[...]
    hid = jnp.maximum(hid, 0.0)
    out_ref[...] = (jnp.dot(hid, w2_ref[...], preferred_element_type=f32)
                    + bh2_ref[...]).astype(out_ref.dtype)


# ----------------------------------------------------------------------------
# Full forward pass (matches the PyTorch module in eval mode).
# ----------------------------------------------------------------------------
@jax.jit
def lstm_model_forward(tokens, params):
    B, T = tokens.shape
    lstm = params["lstm"]

    w_ih1f, w_hh1f, b1f = lstm["l1f"]
    w_ih1b, w_hh1b, b1b = lstm["l1b"]
    w_ih2f, w_hh2f, b2f = lstm["l2f"]
    w_ih2b, w_hh2b, b2b = lstm["l2b"]
    H = w_hh1f.shape[0]
    zH = jnp.zeros((H, 4 * H), jnp.float32)

    # Embedding gather + hoisted layer-1 input projection (one M=T*B matmul per
    # direction, bias folded in), then interleave fwd(t=s) with bwd(t=T-1-s).
    emb = jnp.take(params["embedding"], tokens, axis=0)           # (B, T, E)
    emb_tb = jnp.transpose(emb, (1, 0, 2))                        # (T, B, E)
    gx1f = jnp.einsum("tbe,eg->tbg", emb_tb, w_ih1f) + b1f        # (T, B, 4H)
    gx1b = jnp.einsum("tbe,eg->tbg", emb_tb, w_ih1b) + b1b        # (T, B, 4H)
    gx1_comb = _interleave_gates_tb(gx1f, gx1b[::-1])             # (T, B, 8H)

    # Combined (fwd || bwd) block-diagonal recurrent weights, gate-interleaved.
    whh1_comb = jnp.concatenate([_interleave_cols(w_hh1f, zH),
                                 _interleave_cols(zH, w_hh1b)], axis=0)   # (2H, 8H)
    whh2_comb = jnp.concatenate([_interleave_cols(w_hh2f, zH),
                                 _interleave_cols(zH, w_hh2b)], axis=0)   # (2H, 8H)

    # Layer-2 input projection expressed against hc1[s] and hc1[T-1-s]:
    #   gx2[s] = hc1[s] @ M1 + hc1[T-1-s] @ M2 + b2_comb
    m1 = jnp.concatenate([_interleave_cols(w_ih2f[:H], zH),
                          _interleave_cols(zH, w_ih2b[H:])], axis=0)      # (2H, 8H)
    m2 = jnp.concatenate([_interleave_cols(zH, w_ih2b[:H]),
                          _interleave_cols(w_ih2f[H:], zH)], axis=0)      # (2H, 8H)
    b2_comb = _interleave_cols(b2f, b2b)                                   # (1, 8H)

    kernel = functools.partial(_fused_bilstm_head_kernel, T=T, B=B, H=H)
    return pl.pallas_call(
        kernel,
        out_shape=jax.ShapeDtypeStruct((B, 5), jnp.float32),
    )(
        gx1_comb, whh1_comb, m1, m2, b2_comb, whh2_comb,
        params["w1"], params["b1"], params["w2"], params["b2"],
    )


# ----------------------------------------------------------------------------
# Pure-JAX reference (direct transcription of the PyTorch module, eval mode).
# ----------------------------------------------------------------------------
def _reference_forward(tokens, params):
    lstm = params["lstm"]

    def run_dir(xs, w_ih, w_hh, b, reverse):
        Bx, Tx, _ = xs.shape
        Hx = w_hh.shape[0]
        h = jnp.zeros((Bx, Hx), jnp.float32)
        c = jnp.zeros((Bx, Hx), jnp.float32)
        outs = [None] * Tx
        order = range(Tx - 1, -1, -1) if reverse else range(Tx)
        for t in order:
            g = xs[:, t] @ w_ih + h @ w_hh + b
            i = jax.nn.sigmoid(g[:, 0 * Hx:1 * Hx])
            f = jax.nn.sigmoid(g[:, 1 * Hx:2 * Hx])
            gg = jnp.tanh(g[:, 2 * Hx:3 * Hx])
            o = jax.nn.sigmoid(g[:, 3 * Hx:4 * Hx])
            c = f * c + i * gg
            h = o * jnp.tanh(c)
            outs[t] = h
        return jnp.stack(outs, axis=1), h

    emb = jnp.take(params["embedding"], tokens, axis=0)             # (B, T, E)
    o1f, _ = run_dir(emb, *lstm["l1f"], reverse=False)
    o1b, _ = run_dir(emb, *lstm["l1b"], reverse=True)
    x2 = jnp.concatenate([o1f, o1b], axis=-1)                       # (B, T, 2H)
    _, h2f = run_dir(x2, *lstm["l2f"], reverse=False)
    _, h2b = run_dir(x2, *lstm["l2b"], reverse=True)
    feat = jnp.concatenate([h2f, h2b], axis=-1)                     # (B, 2H)
    hid = jnp.maximum(feat @ params["w1"] + params["b1"], 0.0)
    return hid @ params["w2"] + params["b2"]


# ----------------------------------------------------------------------------
# Parameter initialization (deterministic, synthetic).
# ----------------------------------------------------------------------------
def init_params(key, emb_len, emb_dim, out_dim):
    H = out_dim

    def uniform(k, shape, bound):
        return jax.random.uniform(k, shape, jnp.float32, -bound, bound)

    keys = jax.random.split(key, 32)
    ki = iter(range(32))

    params = {}
    params["embedding"] = jax.random.normal(keys[next(ki)], (emb_len, emb_dim), jnp.float32)

    bound = 1.0 / jnp.sqrt(H)
    lstm = {}
    # layer 1 input = emb_dim, layer 2 input = 2*H (bidirectional)
    for layer, in_dim in ((1, emb_dim), (2, 2 * H)):
        for direction in ("f", "b"):
            w_ih = uniform(keys[next(ki)], (in_dim, 4 * H), bound)
            w_hh = uniform(keys[next(ki)], (H, 4 * H), bound)
            b_ih = uniform(keys[next(ki)], (4 * H,), bound)
            b_hh = uniform(keys[next(ki)], (4 * H,), bound)
            b = (b_ih + b_hh).reshape(1, 4 * H)
            lstm[f"l{layer}{direction}"] = (w_ih, w_hh, b)
    params["lstm"] = lstm

    params["w1"] = uniform(keys[next(ki)], (2 * H, 64), 1.0 / jnp.sqrt(2 * H))
    params["b1"] = uniform(keys[next(ki)], (1, 64), 1.0 / jnp.sqrt(2 * H))
    params["w2"] = uniform(keys[next(ki)], (64, 5), 1.0 / jnp.sqrt(64))
    params["b2"] = uniform(keys[next(ki)], (1, 5), 1.0 / jnp.sqrt(64))
    return params


if __name__ == "__main__":
    EMB_LEN, EMB_DIM, OUT_DIM = 100, 16, 32
    B, T = 2, 8

    key = jax.random.PRNGKey(0)
    k_params, k_tokens = jax.random.split(key)

    params = init_params(k_params, EMB_LEN, EMB_DIM, OUT_DIM)
    tokens = jax.random.randint(k_tokens, (B, T), 0, EMB_LEN, dtype=jnp.int32)

    logits = lstm_model_forward(tokens, params)
    jax.block_until_ready(logits)

    assert logits.shape == (B, 5), logits.shape
    assert logits.dtype == jnp.float32
    assert bool(jnp.all(jnp.isfinite(logits)))

    ref = _reference_forward(tokens, params)
    max_err = float(jnp.max(jnp.abs(logits - ref)))
    assert max_err < 5e-2, f"kernel vs reference max abs diff = {max_err}"

    print("KERNEL_OK")
</pallas_src>

<mosaic_0001>
module attributes {stable_mosaic.version = 11 : i64} {
  func.func @_fused_bilstm_head_kernel(%arg0: memref<8x2x256xf32, #tpu.memory_space<vmem>>, %arg1: memref<64x256xf32, #tpu.memory_space<vmem>>, %arg2: memref<64x256xf32, #tpu.memory_space<vmem>>, %arg3: memref<64x256xf32, #tpu.memory_space<vmem>>, %arg4: memref<1x256xf32, #tpu.memory_space<vmem>>, %arg5: memref<64x256xf32, #tpu.memory_space<vmem>>, %arg6: memref<64x64xf32, #tpu.memory_space<vmem>>, %arg7: memref<1x64xf32, #tpu.memory_space<vmem>>, %arg8: memref<64x5xf32, #tpu.memory_space<vmem>>, %arg9: memref<1x5xf32, #tpu.memory_space<vmem>>, %arg10: memref<2x5xf32, #tpu.memory_space<vmem>>) attributes {dimension_semantics = [], scalar_prefetch = 0 : i64, scratch_operands = 0 : i64, tpu.core_type = #tpu.core_type<tc>} {
    %cst = arith.constant 0.000000e+00 : f32
    %0 = vector.broadcast %cst : f32 to vector<2x64xf32>
    %c0 = arith.constant 0 : index
    %c0_0 = arith.constant 0 : index
    %1 = vector.load %arg1[%c0, %c0_0] : memref<64x256xf32, #tpu.memory_space<vmem>>, vector<64x256xf32>
    %c0_1 = arith.constant 0 : index
    %c0_2 = arith.constant 0 : index
    %c0_3 = arith.constant 0 : index
    %2 = vector.load %arg0[%c0_1, %c0_2, %c0_3] : memref<8x2x256xf32, #tpu.memory_space<vmem>>, vector<1x2x256xf32>
    %3 = vector.shape_cast %2 : vector<1x2x256xf32> to vector<2x256xf32>
    %cst_4 = arith.constant dense<0.000000e+00> : vector<2x256xf32>
    %4 = tpu.matmul %0, %1, %cst_4 {dimension_numbers = #tpu.dot_dimension_numbers<[1], [0], [0], [1], [0, 0, 1, 1], [], []>} : vector<2x64xf32>, vector<64x256xf32>, vector<2x256xf32> -> vector<2x256xf32>
    %5 = arith.addf %3, %4 : vector<2x256xf32>
    %6 = vector.extract_strided_slice %5 {offsets = [0, 0], sizes = [2, 64], strides = [1, 1]} : vector<2x256xf32> to vector<2x64xf32>
    %7 = arith.negf %6 : vector<2x64xf32>
    %8 = math.exp %7 : vector<2x64xf32>
    %cst_5 = arith.constant 1.000000e+00 : f32
    %9 = vector.broadcast %cst_5 : f32 to vector<2x64xf32>
    %10 = arith.addf %9, %8 : vector<2x64xf32>
    %11 = arith.divf %9, %10 : vector<2x64xf32>
    %12 = vector.extract_strided_slice %5 {offsets = [0, 64], sizes = [2, 64], strides = [1, 1]} : vector<2x256xf32> to vector<2x64xf32>
    %13 = arith.negf %12 : vector<2x64xf32>
    %14 = math.exp %13 : vector<2x64xf32>
    %cst_6 = arith.constant 1.000000e+00 : f32
    %15 = vector.broadcast %cst_6 : f32 to vector<2x64xf32>
    %16 = arith.addf %15, %14 : vector<2x64xf32>
    %17 = arith.divf %15, %16 : vector<2x64xf32>
    %18 = vector.extract_strided_slice %5 {offsets = [0, 128], sizes = [2, 64], strides = [1, 1]} : vector<2x256xf32> to vector<2x64xf32>
    %19 = math.tanh %18 : vector<2x64xf32>
    %20 = vector.extract_strided_slice %5 {offsets = [0, 192], sizes = [2, 64], strides = [1, 1]} : vector<2x256xf32> to vector<2x64xf32>
    %21 = arith.negf %20 : vector<2x64xf32>
    %22 = math.exp %21 : vector<2x64xf32>
    %cst_7 = arith.constant 1.000000e+00 : f32
    %23 = vector.broadcast %cst_7 : f32 to vector<2x64xf32>
    %24 = arith.addf %23, %22 : vector<2x64xf32>
    %25 = arith.divf %23, %24 : vector<2x64xf32>
    %26 = arith.mulf %17, %0 : vector<2x64xf32>
    %27 = arith.mulf %11, %19 : vector<2x64xf32>
    %28 = arith.addf %26, %27 : vector<2x64xf32>
    %29 = math.tanh %28 : vector<2x64xf32>
    %30 = arith.mulf %25, %29 : vector<2x64xf32>
    %c1 = arith.constant 1 : index
    %c0_8 = arith.constant 0 : index
    %c0_9 = arith.constant 0 : index
    %31 = vector.load %arg0[%c1, %c0_8, %c0_9] : memref<8x2x256xf32, #tpu.memory_space<vmem>>, vector<1x2x256xf32>
    %32 = vector.shape_cast %31 : vector<1x2x256xf32> to vector<2x256xf32>
    %cst_10 = arith.constant dense<0.000000e+00> : vector<2x256xf32>
    %33 = tpu.matmul %30, %1, %cst_10 {dimension_numbers = #tpu.dot_dimension_numbers<[1], [0], [0], [1], [0, 0, 1, 1], [], []>} : vector<2x64xf32>, vector<64x256xf32>, vector<2x256xf32> -> vector<2x256xf32>
    %34 = arith.addf %32, %33 : vector<2x256xf32>
    %35 = vector.extract_strided_slice %34 {offsets = [0, 0], sizes = [2, 64], strides = [1, 1]} : vector<2x256xf32> to vector<2x64xf32>
    %36 = arith.negf %35 : vector<2x64xf32>
    %37 = math.exp %36 : vector<2x64xf32>
    %cst_11 = arith.constant 1.000000e+00 : f32
    %38 = vector.broadcast %cst_11 : f32 to vector<2x64xf32>
    %39 = arith.addf %38, %37 : vector<2x64xf32>
    %40 = arith.divf %38, %39 : vector<2x64xf32>
    %41 = vector.extract_strided_slice %34 {offsets = [0, 64], sizes = [2, 64], strides = [1, 1]} : vector<2x256xf32> to vector<2x64xf32>
    %42 = arith.negf %41 : vector<2x64xf32>
    %43 = math.exp %42 : vector<2x64xf32>
    %cst_12 = arith.constant 1.000000e+00 : f32
    %44 = vector.broadcast %cst_12 : f32 to vector<2x64xf32>
    %45 = arith.addf %44, %43 : vector<2x64xf32>
    %46 = arith.divf %44, %45 : vector<2x64xf32>
    %47 = vector.extract_strided_slice %34 {offsets = [0, 128], sizes = [2, 64], strides = [1, 1]} : vector<2x256xf32> to vector<2x64xf32>
    %48 = math.tanh %47 : vector<2x64xf32>
    %49 = vector.extract_strided_slice %34 {offsets = [0, 192], sizes = [2, 64], strides = [1, 1]} : vector<2x256xf32> to vector<2x64xf32>
    %50 = arith.negf %49 : vector<2x64xf32>
    %51 = math.exp %50 : vector<2x64xf32>
    %cst_13 = arith.constant 1.000000e+00 : f32
    %52 = vector.broadcast %cst_13 : f32 to vector<2x64xf32>
    %53 = arith.addf %52, %51 : vector<2x64xf32>
    %54 = arith.divf %52, %53 : vector<2x64xf32>
    %55 = arith.mulf %46, %28 : vector<2x64xf32>
    %56 = arith.mulf %40, %48 : vector<2x64xf32>
    %57 = arith.addf %55, %56 : vector<2x64xf32>
    %58 = math.tanh %57 : vector<2x64xf32>
    %59 = arith.mulf %54, %58 : vector<2x64xf32>
    %c2 = arith.constant 2 : index
    %c0_14 = arith.constant 0 : index
    %c0_15 = arith.constant 0 : index
    %60 = vector.load %arg0[%c2, %c0_14, %c0_15] : memref<8x2x256xf32, #tpu.memory_space<vmem>>, vector<1x2x256xf32>
    %61 = vector.shape_cast %60 : vector<1x2x256xf32> to vector<2x256xf32>
    %cst_16 = arith.constant dense<0.000000e+00> : vector<2x256xf32>
    %62 = tpu.matmul %59, %1, %cst_16 {dimension_numbers = #tpu.dot_dimension_numbers<[1], [0], [0], [1], [0, 0, 1, 1], [], []>} : vector<2x64xf32>, vector<64x256xf32>, vector<2x256xf32> -> vector<2x256xf32>
    %63 = arith.addf %61, %62 : vector<2x256xf32>
    %64 = vector.extract_strided_slice %63 {offsets = [0, 0], sizes = [2, 64], strides = [1, 1]} : vector<2x256xf32> to vector<2x64xf32>
    %65 = arith.negf %64 : vector<2x64xf32>
    %66 = math.exp %65 : vector<2x64xf32>
    %cst_17 = arith.constant 1.000000e+00 : f32
    %67 = vector.broadcast %cst_17 : f32 to vector<2x64xf32>
    %68 = arith.addf %67, %66 : vector<2x64xf32>
    %69 = arith.divf %67, %68 : vector<2x64xf32>
    %70 = vector.extract_strided_slice %63 {offsets = [0, 64], sizes = [2, 64], strides = [1, 1]} : vector<2x256xf32> to vector<2x64xf32>
    %71 = arith.negf %70 : vector<2x64xf32>
    %72 = math.exp %71 : vector<2x64xf32>
    %cst_18 = arith.constant 1.000000e+00 : f32
    %73 = vector.broadcast %cst_18 : f32 to vector<2x64xf32>
    %74 = arith.addf %73, %72 : vector<2x64xf32>
    %75 = arith.divf %73, %74 : vector<2x64xf32>
    %76 = vector.extract_strided_slice %63 {offsets = [0, 128], sizes = [2, 64], strides = [1, 1]} : vector<2x256xf32> to vector<2x64xf32>
    %77 = math.tanh %76 : vector<2x64xf32>
    %78 = vector.extract_strided_slice %63 {offsets = [0, 192], sizes = [2, 64], strides = [1, 1]} : vector<2x256xf32> to vector<2x64xf32>
    %79 = arith.negf %78 : vector<2x64xf32>
    %80 = math.exp %79 : vector<2x64xf32>
    %cst_19 = arith.constant 1.000000e+00 : f32
    %81 = vector.broadcast %cst_19 : f32 to vector<2x64xf32>
    %82 = arith.addf %81, %80 : vector<2x64xf32>
    %83 = arith.divf %81, %82 : vector<2x64xf32>
    %84 = arith.mulf %75, %57 : vector<2x64xf32>
    %85 = arith.mulf %69, %77 : vector<2x64xf32>
    %86 = arith.addf %84, %85 : vector<2x64xf32>
    %87 = math.tanh %86 : vector<2x64xf32>
    %88 = arith.mulf %83, %87 : vector<2x64xf32>
    %c3 = arith.constant 3 : index
    %c0_20 = arith.constant 0 : index
    %c0_21 = arith.constant 0 : index
    %89 = vector.load %arg0[%c3, %c0_20, %c0_21] : memref<8x2x256xf32, #tpu.memory_space<vmem>>, vector<1x2x256xf32>
    %90 = vector.shape_cast %89 : vector<1x2x256xf32> to vector<2x256xf32>
    %cst_22 = arith.constant dense<0.000000e+00> : vector<2x256xf32>
    %91 = tpu.matmul %88, %1, %cst_22 {dimension_numbers = #tpu.dot_dimension_numbers<[1], [0], [0], [1], [0, 0, 1, 1], [], []>} : vector<2x64xf32>, vector<64x256xf32>, vector<2x256xf32> -> vector<2x256xf32>
    %92 = arith.addf %90, %91 : vector<2x256xf32>
    %93 = vector.extract_strided_slice %92 {offsets = [0, 0], sizes = [2, 64], strides = [1, 1]} : vector<2x256xf32> to vector<2x64xf32>
    %94 = arith.negf %93 : vector<2x64xf32>
    %95 = math.exp %94 : vector<2x64xf32>
    %cst_23 = arith.constant 1.000000e+00 : f32
    %96 = vector.broadcast %cst_23 : f32 to vector<2x64xf32>
    %97 = arith.addf %96, %95 : vector<2x64xf32>
    %98 = arith.divf %96, %97 : vector<2x64xf32>
    %99 = vector.extract_strided_slice %92 {offsets = [0, 64], sizes = [2, 64], strides = [1, 1]} : vector<2x256xf32> to vector<2x64xf32>
    %100 = arith.negf %99 : vector<2x64xf32>
    %101 = math.exp %100 : vector<2x64xf32>
    %cst_24 = arith.constant 1.000000e+00 : f32
    %102 = vector.broadcast %cst_24 : f32 to vector<2x64xf32>
    %103 = arith.addf %102, %101 : vector<2x64xf32>
    %104 = arith.divf %102, %103 : vector<2x64xf32>
    %105 = vector.extract_strided_slice %92 {offsets = [0, 128], sizes = [2, 64], strides = [1, 1]} : vector<2x256xf32> to vector<2x64xf32>
    %106 = math.tanh %105 : vector<2x64xf32>
    %107 = vector.extract_strided_slice %92 {offsets = [0, 192], sizes = [2, 64], strides = [1, 1]} : vector<2x256xf32> to vector<2x64xf32>
    %108 = arith.negf %107 : vector<2x64xf32>
    %109 = math.exp %108 : vector<2x64xf32>
    %cst_25 = arith.constant 1.000000e+00 : f32
    %110 = vector.broadcast %cst_25 : f32 to vector<2x64xf32>
    %111 = arith.addf %110, %109 : vector<2x64xf32>
    %112 = arith.divf %110, %111 : vector<2x64xf32>
    %113 = arith.mulf %104, %86 : vector<2x64xf32>
    %114 = arith.mulf %98, %106 : vector<2x64xf32>
    %115 = arith.addf %113, %114 : vector<2x64xf32>
    %116 = math.tanh %115 : vector<2x64xf32>
    %117 = arith.mulf %112, %116 : vector<2x64xf32>
    %c4 = arith.constant 4 : index
    %c0_26 = arith.constant 0 : index
    %c0_27 = arith.constant 0 : index
    %118 = vector.load %arg0[%c4, %c0_26, %c0_27] : memref<8x2x256xf32, #tpu.memory_space<vmem>>, vector<1x2x256xf32>
    %119 = vector.shape_cast %118 : vector<1x2x256xf32> to vector<2x256xf32>
    %cst_28 = arith.constant dense<0.000000e+00> : vector<2x256xf32>
    %120 = tpu.matmul %117, %1, %cst_28 {dimension_numbers = #tpu.dot_dimension_numbers<[1], [0], [0], [1], [0, 0, 1, 1], [], []>} : vector<2x64xf32>, vector<64x256xf32>, vector<2x256xf32> -> vector<2x256xf32>
    %121 = arith.addf %119, %120 : vector<2x256xf32>
    %122 = vector.extract_strided_slice %121 {offsets = [0, 0], sizes = [2, 64], strides = [1, 1]} : vector<2x256xf32> to vector<2x64xf32>
    %123 = arith.negf %122 : vector<2x64xf32>
    %124 = math.exp %123 : vector<2x64xf32>
    %cst_29 = arith.constant 1.000000e+00 : f32
    %125 = vector.broadcast %cst_29 : f32 to vector<2x64xf32>
    %126 = arith.addf %125, %124 : vector<2x64xf32>
    %127 = arith.divf %125, %126 : vector<2x64xf32>
    %128 = vector.extract_strided_slice %121 {offsets = [0, 64], sizes = [2, 64], strides = [1, 1]} : vector<2x256xf32> to vector<2x64xf32>
    %129 = arith.negf %128 : vector<2x64xf32>
    %130 = math.exp %129 : vector<2x64xf32>
    %cst_30 = arith.constant 1.000000e+00 : f32
    %131 = vector.broadcast %cst_30 : f32 to vector<2x64xf32>
    %132 = arith.addf %131, %130 : vector<2x64xf32>
    %133 = arith.divf %131, %132 : vector<2x64xf32>
    %134 = vector.extract_strided_slice %121 {offsets = [0, 128], sizes = [2, 64], strides = [1, 1]} : vector<2x256xf32> to vector<2x64xf32>
    %135 = math.tanh %134 : vector<2x64xf32>
    %136 = vector.extract_strided_slice %121 {offsets = [0, 192], sizes = [2, 64], strides = [1, 1]} : vector<2x256xf32> to vector<2x64xf32>
    %137 = arith.negf %136 : vector<2x64xf32>
    %138 = math.exp %137 : vector<2x64xf32>
    %cst_31 = arith.constant 1.000000e+00 : f32
    %139 = vector.broadcast %cst_31 : f32 to vector<2x64xf32>
    %140 = arith.addf %139, %138 : vector<2x64xf32>
    %141 = arith.divf %139, %140 : vector<2x64xf32>
    %142 = arith.mulf %133, %115 : vector<2x64xf32>
    %143 = arith.mulf %127, %135 : vector<2x64xf32>
    %144 = arith.addf %142, %143 : vector<2x64xf32>
    %145 = math.tanh %144 : vector<2x64xf32>
    %146 = arith.mulf %141, %145 : vector<2x64xf32>
    %c5 = arith.constant 5 : index
    %c0_32 = arith.constant 0 : index
    %c0_33 = arith.constant 0 : index
    %147 = vector.load %arg0[%c5, %c0_32, %c0_33] : memref<8x2x256xf32, #tpu.memory_space<vmem>>, vector<1x2x256xf32>
    %148 = vector.shape_cast %147 : vector<1x2x256xf32> to vector<2x256xf32>
    %cst_34 = arith.constant dense<0.000000e+00> : vector<2x256xf32>
    %149 = tpu.matmul %146, %1, %cst_34 {dimension_numbers = #tpu.dot_dimension_numbers<[1], [0], [0], [1], [0, 0, 1, 1], [], []>} : vector<2x64xf32>, vector<64x256xf32>, vector<2x256xf32> -> vector<2x256xf32>
    %150 = arith.addf %148, %149 : vector<2x256xf32>
    %151 = vector.extract_strided_slice %150 {offsets = [0, 0], sizes = [2, 64], strides = [1, 1]} : vector<2x256xf32> to vector<2x64xf32>
    %152 = arith.negf %151 : vector<2x64xf32>
    %153 = math.exp %152 : vector<2x64xf32>
    %cst_35 = arith.constant 1.000000e+00 : f32
    %154 = vector.broadcast %cst_35 : f32 to vector<2x64xf32>
    %155 = arith.addf %154, %153 : vector<2x64xf32>
    %156 = arith.divf %154, %155 : vector<2x64xf32>
    %157 = vector.extract_strided_slice %150 {offsets = [0, 64], sizes = [2, 64], strides = [1, 1]} : vector<2x256xf32> to vector<2x64xf32>
    %158 = arith.negf %157 : vector<2x64xf32>
    %159 = math.exp %158 : vector<2x64xf32>
    %cst_36 = arith.constant 1.000000e+00 : f32
    %160 = vector.broadcast %cst_36 : f32 to vector<2x64xf32>
    %161 = arith.addf %160, %159 : vector<2x64xf32>
    %162 = arith.divf %160, %161 : vector<2x64xf32>
    %163 = vector.extract_strided_slice %150 {offsets = [0, 128], sizes = [2, 64], strides = [1, 1]} : vector<2x256xf32> to vector<2x64xf32>
    %164 = math.tanh %163 : vector<2x64xf32>
    %165 = vector.extract_strided_slice %150 {offsets = [0, 192], sizes = [2, 64], strides = [1, 1]} : vector<2x256xf32> to vector<2x64xf32>
    %166 = arith.negf %165 : vector<2x64xf32>
    %167 = math.exp %166 : vector<2x64xf32>
    %cst_37 = arith.constant 1.000000e+00 : f32
    %168 = vector.broadcast %cst_37 : f32 to vector<2x64xf32>
    %169 = arith.addf %168, %167 : vector<2x64xf32>
    %170 = arith.divf %168, %169 : vector<2x64xf32>
    %171 = arith.mulf %162, %144 : vector<2x64xf32>
    %172 = arith.mulf %156, %164 : vector<2x64xf32>
    %173 = arith.addf %171, %172 : vector<2x64xf32>
    %174 = math.tanh %173 : vector<2x64xf32>
    %175 = arith.mulf %170, %174 : vector<2x64xf32>
    %c6 = arith.constant 6 : index
    %c0_38 = arith.constant 0 : index
    %c0_39 = arith.constant 0 : index
    %176 = vector.load %arg0[%c6, %c0_38, %c0_39] : memref<8x2x256xf32, #tpu.memory_space<vmem>>, vector<1x2x256xf32>
    %177 = vector.shape_cast %176 : vector<1x2x256xf32> to vector<2x256xf32>
    %cst_40 = arith.constant dense<0.000000e+00> : vector<2x256xf32>
    %178 = tpu.matmul %175, %1, %cst_40 {dimension_numbers = #tpu.dot_dimension_numbers<[1], [0], [0], [1], [0, 0, 1, 1], [], []>} : vector<2x64xf32>, vector<64x256xf32>, vector<2x256xf32> -> vector<2x256xf32>
    %179 = arith.addf %177, %178 : vector<2x256xf32>
    %180 = vector.extract_strided_slice %179 {offsets = [0, 0], sizes = [2, 64], strides = [1, 1]} : vector<2x256xf32> to vector<2x64xf32>
    %181 = arith.negf %180 : vector<2x64xf32>
    %182 = math.exp %181 : vector<2x64xf32>
    %cst_41 = arith.constant 1.000000e+00 : f32
    %183 = vector.broadcast %cst_41 : f32 to vector<2x64xf32>
    %184 = arith.addf %183, %182 : vector<2x64xf32>
    %185 = arith.divf %183, %184 : vector<2x64xf32>
    %186 = vector.extract_strided_slice %179 {offsets = [0, 64], sizes = [2, 64], strides = [1, 1]} : vector<2x256xf32> to vector<2x64xf32>
    %187 = arith.negf %186 : vector<2x64xf32>
    %188 = math.exp %187 : vector<2x64xf32>
    %cst_42 = arith.constant 1.000000e+00 : f32
    %189 = vector.broadcast %cst_42 : f32 to vector<2x64xf32>
    %190 = arith.addf %189, %188 : vector<2x64xf32>
    %191 = arith.divf %189, %190 : vector<2x64xf32>
    %192 = vector.extract_strided_slice %179 {offsets = [0, 128], sizes = [2, 64], strides = [1, 1]} : vector<2x256xf32> to vector<2x64xf32>
    %193 = math.tanh %192 : vector<2x64xf32>
    %194 = vector.extract_strided_slice %179 {offsets = [0, 192], sizes = [2, 64], strides = [1, 1]} : vector<2x256xf32> to vector<2x64xf32>
    %195 = arith.negf %194 : vector<2x64xf32>
    %196 = math.exp %195 : vector<2x64xf32>
    %cst_43 = arith.constant 1.000000e+00 : f32
    %197 = vector.broadcast %cst_43 : f32 to vector<2x64xf32>
    %198 = arith.addf %197, %196 : vector<2x64xf32>
    %199 = arith.divf %197, %198 : vector<2x64xf32>
    %200 = arith.mulf %191, %173 : vector<2x64xf32>
    %201 = arith.mulf %185, %193 : vector<2x64xf32>
    %202 = arith.addf %200, %201 : vector<2x64xf32>
    %203 = math.tanh %202 : vector<2x64xf32>
    %204 = arith.mulf %199, %203 : vector<2x64xf32>
    %c7 = arith.constant 7 : index
    %c0_44 = arith.constant 0 : index
    %c0_45 = arith.constant 0 : index
    %205 = vector.load %arg0[%c7, %c0_44, %c0_45] : memref<8x2x256xf32, #tpu.memory_space<vmem>>, vector<1x2x256xf32>
    %206 = vector.shape_cast %205 : vector<1x2x256xf32> to vector<2x256xf32>
    %cst_46 = arith.constant dense<0.000000e+00> : vector<2x256xf32>
    %207 = tpu.matmul %204, %1, %cst_46 {dimension_numbers = #tpu.dot_dimension_numbers<[1], [0], [0], [1], [0, 0, 1, 1], [], []>} : vector<2x64xf32>, vector<64x256xf32>, vector<2x256xf32> -> vector<2x256xf32>
    %208 = arith.addf %206, %207 : vector<2x256xf32>
    %209 = vector.extract_strided_slice %208 {offsets = [0, 0], sizes = [2, 64], strides = [1, 1]} : vector<2x256xf32> to vector<2x64xf32>
    %210 = arith.negf %209 : vector<2x64xf32>
    %211 = math.exp %210 : vector<2x64xf32>
    %cst_47 = arith.constant 1.000000e+00 : f32
    %212 = vector.broadcast %cst_47 : f32 to vector<2x64xf32>
    %213 = arith.addf %212, %211 : vector<2x64xf32>
    %214 = arith.divf %212, %213 : vector<2x64xf32>
    %215 = vector.extract_strided_slice %208 {offsets = [0, 64], sizes = [2, 64], strides = [1, 1]} : vector<2x256xf32> to vector<2x64xf32>
    %216 = arith.negf %215 : vector<2x64xf32>
    %217 = math.exp %216 : vector<2x64xf32>
    %cst_48 = arith.constant 1.000000e+00 : f32
    %218 = vector.broadcast %cst_48 : f32 to vector<2x64xf32>
    %219 = arith.addf %218, %217 : vector<2x64xf32>
    %220 = arith.divf %218, %219 : vector<2x64xf32>
    %221 = vector.extract_strided_slice %208 {offsets = [0, 128], sizes = [2, 64], strides = [1, 1]} : vector<2x256xf32> to vector<2x64xf32>
    %222 = math.tanh %221 : vector<2x64xf32>
    %223 = vector.extract_strided_slice %208 {offsets = [0, 192], sizes = [2, 64], strides = [1, 1]} : vector<2x256xf32> to vector<2x64xf32>
    %224 = arith.negf %223 : vector<2x64xf32>
    %225 = math.exp %224 : vector<2x64xf32>
    %cst_49 = arith.constant 1.000000e+00 : f32
    %226 = vector.broadcast %cst_49 : f32 to vector<2x64xf32>
    %227 = arith.addf %226, %225 : vector<2x64xf32>
    %228 = arith.divf %226, %227 : vector<2x64xf32>
    %229 = arith.mulf %220, %202 : vector<2x64xf32>
    %230 = arith.mulf %214, %222 : vector<2x64xf32>
    %231 = arith.addf %229, %230 : vector<2x64xf32>
    %232 = math.tanh %231 : vector<2x64xf32>
    %233 = arith.mulf %228, %232 : vector<2x64xf32>
    %234 = tpu.concatenate %30, %59, %88, %117, %146, %175, %204, %233 in 0 : vector<2x64xf32>, vector<2x64xf32>, vector<2x64xf32>, vector<2x64xf32>, vector<2x64xf32>, vector<2x64xf32>, vector<2x64xf32>, vector<2x64xf32> -> vector<16x64xf32>
    %c0_50 = arith.constant 0 : index
    %c0_51 = arith.constant 0 : index
    %235 = vector.load %arg2[%c0_50, %c0_51] : memref<64x256xf32, #tpu.memory_space<vmem>>, vector<64x256xf32>
    %cst_52 = arith.constant dense<0.000000e+00> : vector<16x256xf32>
    %236 = tpu.matmul %234, %235, %cst_52 {dimension_numbers = #tpu.dot_dimension_numbers<[1], [0], [0], [1], [0, 0, 1, 1], [], []>} : vector<16x64xf32>, vector<64x256xf32>, vector<16x256xf32> -> vector<16x256xf32>
    %c0_53 = arith.constant 0 : index
    %c0_54 = arith.constant 0 : index
    %237 = vector.load %arg3[%c0_53, %c0_54] : memref<64x256xf32, #tpu.memory_space<vmem>>, vector<64x256xf32>
    %cst_55 = arith.constant dense<0.000000e+00> : vector<16x256xf32>
    %238 = tpu.matmul %234, %237, %cst_55 {dimension_numbers = #tpu.dot_dimension_numbers<[1], [0], [0], [1], [0, 0, 1, 1], [], []>} : vector<16x64xf32>, vector<64x256xf32>, vector<16x256xf32> -> vector<16x256xf32>
    %c0_56 = arith.constant 0 : index
    %c0_57 = arith.constant 0 : index
    %239 = vector.load %arg4[%c0_56, %c0_57] : memref<1x256xf32, #tpu.memory_space<vmem>>, vector<1x256xf32>
    %c0_58 = arith.constant 0 : index
    %c0_59 = arith.constant 0 : index
    %240 = vector.load %arg5[%c0_58, %c0_59] : memref<64x256xf32, #tpu.memory_space<vmem>>, vector<64x256xf32>
    %241 = vector.extract_strided_slice %236 {offsets = [0, 0], sizes = [2, 256], strides = [1, 1]} : vector<16x256xf32> to vector<2x256xf32>
    %242 = vector.extract_strided_slice %238 {offsets = [14, 0], sizes = [2, 256], strides = [1, 1]} : vector<16x256xf32> to vector<2x256xf32>
    %243 = arith.addf %241, %242 : vector<2x256xf32>
    %244 = vector.broadcast %239 : vector<1x256xf32> to vector<2x256xf32>
    %245 = arith.addf %243, %244 : vector<2x256xf32>
    %cst_60 = arith.constant dense<0.000000e+00> : vector<2x256xf32>
    %246 = tpu.matmul %0, %240, %cst_60 {dimension_numbers = #tpu.dot_dimension_numbers<[1], [0], [0], [1], [0, 0, 1, 1], [], []>} : vector<2x64xf32>, vector<64x256xf32>, vector<2x256xf32> -> vector<2x256xf32>
    %247 = arith.addf %245, %246 : vector<2x256xf32>
    %248 = vector.extract_strided_slice %247 {offsets = [0, 0], sizes = [2, 64], strides = [1, 1]} : vector<2x256xf32> to vector<2x64xf32>
    %249 = arith.negf %248 : vector<2x64xf32>
    %250 = math.exp %249 : vector<2x64xf32>
    %cst_61 = arith.constant 1.000000e+00 : f32
    %251 = vector.broadcast %cst_61 : f32 to vector<2x64xf32>
    %252 = arith.addf %251, %250 : vector<2x64xf32>
    %253 = arith.divf %251, %252 : vector<2x64xf32>
    %254 = vector.extract_strided_slice %247 {offsets = [0, 64], sizes = [2, 64], strides = [1, 1]} : vector<2x256xf32> to vector<2x64xf32>
    %255 = arith.negf %254 : vector<2x64xf32>
    %256 = math.exp %255 : vector<2x64xf32>
    %cst_62 = arith.constant 1.000000e+00 : f32
    %257 = vector.broadcast %cst_62 : f32 to vector<2x64xf32>
    %258 = arith.addf %257, %256 : vector<2x64xf32>
    %259 = arith.divf %257, %258 : vector<2x64xf32>
    %260 = vector.extract_strided_slice %247 {offsets = [0, 128], sizes = [2, 64], strides = [1, 1]} : vector<2x256xf32> to vector<2x64xf32>
    %261 = math.tanh %260 : vector<2x64xf32>
    %262 = vector.extract_strided_slice %247 {offsets = [0, 192], sizes = [2, 64], strides = [1, 1]} : vector<2x256xf32> to vector<2x64xf32>
    %263 = arith.negf %262 : vector<2x64xf32>
    %264 = math.exp %263 : vector<2x64xf32>
    %cst_63 = arith.constant 1.000000e+00 : f32
    %265 = vector.broadcast %cst_63 : f32 to vector<2x64xf32>
    %266 = arith.addf %265, %264 : vector<2x64xf32>
    %267 = arith.divf %265, %266 : vector<2x64xf32>
    %268 = arith.mulf %259, %0 : vector<2x64xf32>
    %269 = arith.mulf %253, %261 : vector<2x64xf32>
    %270 = arith.addf %268, %269 : vector<2x64xf32>
    %271 = math.tanh %270 : vector<2x64xf32>
    %272 = arith.mulf %267, %271 : vector<2x64xf32>
    %273 = vector.extract_strided_slice %236 {offsets = [2, 0], sizes = [2, 256], strides = [1, 1]} : vector<16x256xf32> to vector<2x256xf32>
    %274 = vector.extract_strided_slice %238 {offsets = [12, 0], sizes = [2, 256], strides = [1, 1]} : vector<16x256xf32> to vector<2x256xf32>
    %275 = arith.addf %273, %274 : vector<2x256xf32>
    %276 = vector.broadcast %239 : vector<1x256xf32> to vector<2x256xf32>
    %277 = arith.addf %275, %276 : vector<2x256xf32>
    %cst_64 = arith.constant dense<0.000000e+00> : vector<2x256xf32>
    %278 = tpu.matmul %272, %240, %cst_64 {dimension_numbers = #tpu.dot_dimension_numbers<[1], [0], [0], [1], [0, 0, 1, 1], [], []>} : vector<2x64xf32>, vector<64x256xf32>, vector<2x256xf32> -> vector<2x256xf32>
    %279 = arith.addf %277, %278 : vector<2x256xf32>
    %280 = vector.extract_strided_slice %279 {offsets = [0, 0], sizes = [2, 64], strides = [1, 1]} : vector<2x256xf32> to vector<2x64xf32>
    %281 = arith.negf %280 : vector<2x64xf32>
    %282 = math.exp %281 : vector<2x64xf32>
    %cst_65 = arith.constant 1.000000e+00 : f32
    %283 = vector.broadcast %cst_65 : f32 to vector<2x64xf32>
    %284 = arith.addf %283, %282 : vector<2x64xf32>
    %285 = arith.divf %283, %284 : vector<2x64xf32>
    %286 = vector.extract_strided_slice %279 {offsets = [0, 64], sizes = [2, 64], strides = [1, 1]} : vector<2x256xf32> to vector<2x64xf32>
    %287 = arith.negf %286 : vector<2x64xf32>
    %288 = math.exp %287 : vector<2x64xf32>
    %cst_66 = arith.constant 1.000000e+00 : f32
    %289 = vector.broadcast %cst_66 : f32 to vector<2x64xf32>
    %290 = arith.addf %289, %288 : vector<2x64xf32>
    %291 = arith.divf %289, %290 : vector<2x64xf32>
    %292 = vector.extract_strided_slice %279 {offsets = [0, 128], sizes = [2, 64], strides = [1, 1]} : vector<2x256xf32> to vector<2x64xf32>
    %293 = math.tanh %292 : vector<2x64xf32>
    %294 = vector.extract_strided_slice %279 {offsets = [0, 192], sizes = [2, 64], strides = [1, 1]} : vector<2x256xf32> to vector<2x64xf32>
    %295 = arith.negf %294 : vector<2x64xf32>
    %296 = math.exp %295 : vector<2x64xf32>
    %cst_67 = arith.constant 1.000000e+00 : f32
    %297 = vector.broadcast %cst_67 : f32 to vector<2x64xf32>
    %298 = arith.addf %297, %296 : vector<2x64xf32>
    %299 = arith.divf %297, %298 : vector<2x64xf32>
    %300 = arith.mulf %291, %270 : vector<2x64xf32>
    %301 = arith.mulf %285, %293 : vector<2x64xf32>
    %302 = arith.addf %300, %301 : vector<2x64xf32>
    %303 = math.tanh %302 : vector<2x64xf32>
    %304 = arith.mulf %299, %303 : vector<2x64xf32>
    %305 = vector.extract_strided_slice %236 {offsets = [4, 0], sizes = [2, 256], strides = [1, 1]} : vector<16x256xf32> to vector<2x256xf32>
    %306 = vector.extract_strided_slice %238 {offsets = [10, 0], sizes = [2, 256], strides = [1, 1]} : vector<16x256xf32> to vector<2x256xf32>
    %307 = arith.addf %305, %306 : vector<2x256xf32>
    %308 = vector.broadcast %239 : vector<1x256xf32> to vector<2x256xf32>
    %309 = arith.addf %307, %308 : vector<2x256xf32>
    %cst_68 = arith.constant dense<0.000000e+00> : vector<2x256xf32>
    %310 = tpu.matmul %304, %240, %cst_68 {dimension_numbers = #tpu.dot_dimension_numbers<[1], [0], [0], [1], [0, 0, 1, 1], [], []>} : vector<2x64xf32>, vector<64x256xf32>, vector<2x256xf32> -> vector<2x256xf32>
    %311 = arith.addf %309, %310 : vector<2x256xf32>
    %312 = vector.extract_strided_slice %311 {offsets = [0, 0], sizes = [2, 64], strides = [1, 1]} : vector<2x256xf32> to vector<2x64xf32>
    %313 = arith.negf %312 : vector<2x64xf32>
    %314 = math.exp %313 : vector<2x64xf32>
    %cst_69 = arith.constant 1.000000e+00 : f32
    %315 = vector.broadcast %cst_69 : f32 to vector<2x64xf32>
    %316 = arith.addf %315, %314 : vector<2x64xf32>
    %317 = arith.divf %315, %316 : vector<2x64xf32>
    %318 = vector.extract_strided_slice %311 {offsets = [0, 64], sizes = [2, 64], strides = [1, 1]} : vector<2x256xf32> to vector<2x64xf32>
    %319 = arith.negf %318 : vector<2x64xf32>
    %320 = math.exp %319 : vector<2x64xf32>
    %cst_70 = arith.constant 1.000000e+00 : f32
    %321 = vector.broadcast %cst_70 : f32 to vector<2x64xf32>
    %322 = arith.addf %321, %320 : vector<2x64xf32>
    %323 = arith.divf %321, %322 : vector<2x64xf32>
    %324 = vector.extract_strided_slice %311 {offsets = [0, 128], sizes = [2, 64], strides = [1, 1]} : vector<2x256xf32> to vector<2x64xf32>
    %325 = math.tanh %324 : vector<2x64xf32>
    %326 = vector.extract_strided_slice %311 {offsets = [0, 192], sizes = [2, 64], strides = [1, 1]} : vector<2x256xf32> to vector<2x64xf32>
    %327 = arith.negf %326 : vector<2x64xf32>
    %328 = math.exp %327 : vector<2x64xf32>
    %cst_71 = arith.constant 1.000000e+00 : f32
    %329 = vector.broadcast %cst_71 : f32 to vector<2x64xf32>
    %330 = arith.addf %329, %328 : vector<2x64xf32>
    %331 = arith.divf %329, %330 : vector<2x64xf32>
    %332 = arith.mulf %323, %302 : vector<2x64xf32>
    %333 = arith.mulf %317, %325 : vector<2x64xf32>
    %334 = arith.addf %332, %333 : vector<2x64xf32>
    %335 = math.tanh %334 : vector<2x64xf32>
    %336 = arith.mulf %331, %335 : vector<2x64xf32>
    %337 = vector.extract_strided_slice %236 {offsets = [6, 0], sizes = [2, 256], strides = [1, 1]} : vector<16x256xf32> to vector<2x256xf32>
    %338 = vector.extract_strided_slice %238 {offsets = [8, 0], sizes = [2, 256], strides = [1, 1]} : vector<16x256xf32> to vector<2x256xf32>
    %339 = arith.addf %337, %338 : vector<2x256xf32>
    %340 = vector.broadcast %239 : vector<1x256xf32> to vector<2x256xf32>
    %341 = arith.addf %339, %340 : vector<2x256xf32>
    %cst_72 = arith.constant dense<0.000000e+00> : vector<2x256xf32>
    %342 = tpu.matmul %336, %240, %cst_72 {dimension_numbers = #tpu.dot_dimension_numbers<[1], [0], [0], [1], [0, 0, 1, 1], [], []>} : vector<2x64xf32>, vector<64x256xf32>, vector<2x256xf32> -> vector<2x256xf32>
    %343 = arith.addf %341, %342 : vector<2x256xf32>
    %344 = vector.extract_strided_slice %343 {offsets = [0, 0], sizes = [2, 64], strides = [1, 1]} : vector<2x256xf32> to vector<2x64xf32>
    %345 = arith.negf %344 : vector<2x64xf32>
    %346 = math.exp %345 : vector<2x64xf32>
    %cst_73 = arith.constant 1.000000e+00 : f32
    %347 = vector.broadcast %cst_73 : f32 to vector<2x64xf32>
    %348 = arith.addf %347, %346 : vector<2x64xf32>
    %349 = arith.divf %347, %348 : vector<2x64xf32>
    %350 = vector.extract_strided_slice %343 {offsets = [0, 64], sizes = [2, 64], strides = [1, 1]} : vector<2x256xf32> to vector<2x64xf32>
    %351 = arith.negf %350 : vector<2x64xf32>
    %352 = math.exp %351 : vector<2x64xf32>
    %cst_74 = arith.constant 1.000000e+00 : f32
    %353 = vector.broadcast %cst_74 : f32 to vector<2x64xf32>
    %354 = arith.addf %353, %352 : vector<2x64xf32>
    %355 = arith.divf %353, %354 : vector<2x64xf32>
    %356 = vector.extract_strided_slice %343 {offsets = [0, 128], sizes = [2, 64], strides = [1, 1]} : vector<2x256xf32> to vector<2x64xf32>
    %357 = math.tanh %356 : vector<2x64xf32>
    %358 = vector.extract_strided_slice %343 {offsets = [0, 192], sizes = [2, 64], strides = [1, 1]} : vector<2x256xf32> to vector<2x64xf32>
    %359 = arith.negf %358 : vector<2x64xf32>
    %360 = math.exp %359 : vector<2x64xf32>
    %cst_75 = arith.constant 1.000000e+00 : f32
    %361 = vector.broadcast %cst_75 : f32 to vector<2x64xf32>
    %362 = arith.addf %361, %360 : vector<2x64xf32>
    %363 = arith.divf %361, %362 : vector<2x64xf32>
    %364 = arith.mulf %355, %334 : vector<2x64xf32>
    %365 = arith.mulf %349, %357 : vector<2x64xf32>
    %366 = arith.addf %364, %365 : vector<2x64xf32>
    %367 = math.tanh %366 : vector<2x64xf32>
    %368 = arith.mulf %363, %367 : vector<2x64xf32>
    %369 = vector.extract_strided_slice %236 {offsets = [8, 0], sizes = [2, 256], strides = [1, 1]} : vector<16x256xf32> to vector<2x256xf32>
    %370 = vector.extract_strided_slice %238 {offsets = [6, 0], sizes = [2, 256], strides = [1, 1]} : vector<16x256xf32> to vector<2x256xf32>
    %371 = arith.addf %369, %370 : vector<2x256xf32>
    %372 = vector.broadcast %239 : vector<1x256xf32> to vector<2x256xf32>
    %373 = arith.addf %371, %372 : vector<2x256xf32>
    %cst_76 = arith.constant dense<0.000000e+00> : vector<2x256xf32>
    %374 = tpu.matmul %368, %240, %cst_76 {dimension_numbers = #tpu.dot_dimension_numbers<[1], [0], [0], [1], [0, 0, 1, 1], [], []>} : vector<2x64xf32>, vector<64x256xf32>, vector<2x256xf32> -> vector<2x256xf32>
    %375 = arith.addf %373, %374 : vector<2x256xf32>
    %376 = vector.extract_strided_slice %375 {offsets = [0, 0], sizes = [2, 64], strides = [1, 1]} : vector<2x256xf32> to vector<2x64xf32>
    %377 = arith.negf %376 : vector<2x64xf32>
    %378 = math.exp %377 : vector<2x64xf32>
    %cst_77 = arith.constant 1.000000e+00 : f32
    %379 = vector.broadcast %cst_77 : f32 to vector<2x64xf32>
    %380 = arith.addf %379, %378 : vector<2x64xf32>
    %381 = arith.divf %379, %380 : vector<2x64xf32>
    %382 = vector.extract_strided_slice %375 {offsets = [0, 64], sizes = [2, 64], strides = [1, 1]} : vector<2x256xf32> to vector<2x64xf32>
    %383 = arith.negf %382 : vector<2x64xf32>
    %384 = math.exp %383 : vector<2x64xf32>
    %cst_78 = arith.constant 1.000000e+00 : f32
    %385 = vector.broadcast %cst_78 : f32 to vector<2x64xf32>
    %386 = arith.addf %385, %384 : vector<2x64xf32>
    %387 = arith.divf %385, %386 : vector<2x64xf32>
    %388 = vector.extract_strided_slice %375 {offsets = [0, 128], sizes = [2, 64], strides = [1, 1]} : vector<2x256xf32> to vector<2x64xf32>
    %389 = math.tanh %388 : vector<2x64xf32>
    %390 = vector.extract_strided_slice %375 {offsets = [0, 192], sizes = [2, 64], strides = [1, 1]} : vector<2x256xf32> to vector<2x64xf32>
    %391 = arith.negf %390 : vector<2x64xf32>
    %392 = math.exp %391 : vector<2x64xf32>
    %cst_79 = arith.constant 1.000000e+00 : f32
    %393 = vector.broadcast %cst_79 : f32 to vector<2x64xf32>
    %394 = arith.addf %393, %392 : vector<2x64xf32>
    %395 = arith.divf %393, %394 : vector<2x64xf32>
    %396 = arith.mulf %387, %366 : vector<2x64xf32>
    %397 = arith.mulf %381, %389 : vector<2x64xf32>
    %398 = arith.addf %396, %397 : vector<2x64xf32>
    %399 = math.tanh %398 : vector<2x64xf32>
    %400 = arith.mulf %395, %399 : vector<2x64xf32>
    %401 = vector.extract_strided_slice %236 {offsets = [10, 0], sizes = [2, 256], strides = [1, 1]} : vector<16x256xf32> to vector<2x256xf32>
    %402 = vector.extract_strided_slice %238 {offsets = [4, 0], sizes = [2, 256], strides = [1, 1]} : vector<16x256xf32> to vector<2x256xf32>
    %403 = arith.addf %401, %402 : vector<2x256xf32>
    %404 = vector.broadcast %239 : vector<1x256xf32> to vector<2x256xf32>
    %405 = arith.addf %403, %404 : vector<2x256xf32>
    %cst_80 = arith.constant dense<0.000000e+00> : vector<2x256xf32>
    %406 = tpu.matmul %400, %240, %cst_80 {dimension_numbers = #tpu.dot_dimension_numbers<[1], [0], [0], [1], [0, 0, 1, 1], [], []>} : vector<2x64xf32>, vector<64x256xf32>, vector<2x256xf32> -> vector<2x256xf32>
    %407 = arith.addf %405, %406 : vector<2x256xf32>
    %408 = vector.extract_strided_slice %407 {offsets = [0, 0], sizes = [2, 64], strides = [1, 1]} : vector<2x256xf32> to vector<2x64xf32>
    %409 = arith.negf %408 : vector<2x64xf32>
    %410 = math.exp %409 : vector<2x64xf32>
    %cst_81 = arith.constant 1.000000e+00 : f32
    %411 = vector.broadcast %cst_81 : f32 to vector<2x64xf32>
    %412 = arith.addf %411, %410 : vector<2x64xf32>
    %413 = arith.divf %411, %412 : vector<2x64xf32>
    %414 = vector.extract_strided_slice %407 {offsets = [0, 64], sizes = [2, 64], strides = [1, 1]} : vector<2x256xf32> to vector<2x64xf32>
    %415 = arith.negf %414 : vector<2x64xf32>
    %416 = math.exp %415 : vector<2x64xf32>
    %cst_82 = arith.constant 1.000000e+00 : f32
    %417 = vector.broadcast %cst_82 : f32 to vector<2x64xf32>
    %418 = arith.addf %417, %416 : vector<2x64xf32>
    %419 = arith.divf %417, %418 : vector<2x64xf32>
    %420 = vector.extract_strided_slice %407 {offsets = [0, 128], sizes = [2, 64], strides = [1, 1]} : vector<2x256xf32> to vector<2x64xf32>
    %421 = math.tanh %420 : vector<2x64xf32>
    %422 = vector.extract_strided_slice %407 {offsets = [0, 192], sizes = [2, 64], strides = [1, 1]} : vector<2x256xf32> to vector<2x64xf32>
    %423 = arith.negf %422 : vector<2x64xf32>
    %424 = math.exp %423 : vector<2x64xf32>
    %cst_83 = arith.constant 1.000000e+00 : f32
    %425 = vector.broadcast %cst_83 : f32 to vector<2x64xf32>
    %426 = arith.addf %425, %424 : vector<2x64xf32>
    %427 = arith.divf %425, %426 : vector<2x64xf32>
    %428 = arith.mulf %419, %398 : vector<2x64xf32>
    %429 = arith.mulf %413, %421 : vector<2x64xf32>
    %430 = arith.addf %428, %429 : vector<2x64xf32>
    %431 = math.tanh %430 : vector<2x64xf32>
    %432 = arith.mulf %427, %431 : vector<2x64xf32>
    %433 = vector.extract_strided_slice %236 {offsets = [12, 0], sizes = [2, 256], strides = [1, 1]} : vector<16x256xf32> to vector<2x256xf32>
    %434 = vector.extract_strided_slice %238 {offsets = [2, 0], sizes = [2, 256], strides = [1, 1]} : vector<16x256xf32> to vector<2x256xf32>
    %435 = arith.addf %433, %434 : vector<2x256xf32>
    %436 = vector.broadcast %239 : vector<1x256xf32> to vector<2x256xf32>
    %437 = arith.addf %435, %436 : vector<2x256xf32>
    %cst_84 = arith.constant dense<0.000000e+00> : vector<2x256xf32>
    %438 = tpu.matmul %432, %240, %cst_84 {dimension_numbers = #tpu.dot_dimension_numbers<[1], [0], [0], [1], [0, 0, 1, 1], [], []>} : vector<2x64xf32>, vector<64x256xf32>, vector<2x256xf32> -> vector<2x256xf32>
    %439 = arith.addf %437, %438 : vector<2x256xf32>
    %440 = vector.extract_strided_slice %439 {offsets = [0, 0], sizes = [2, 64], strides = [1, 1]} : vector<2x256xf32> to vector<2x64xf32>
    %441 = arith.negf %440 : vector<2x64xf32>
    %442 = math.exp %441 : vector<2x64xf32>
    %cst_85 = arith.constant 1.000000e+00 : f32
    %443 = vector.broadcast %cst_85 : f32 to vector<2x64xf32>
    %444 = arith.addf %443, %442 : vector<2x64xf32>
    %445 = arith.divf %443, %444 : vector<2x64xf32>
    %446 = vector.extract_strided_slice %439 {offsets = [0, 64], sizes = [2, 64], strides = [1, 1]} : vector<2x256xf32> to vector<2x64xf32>
    %447 = arith.negf %446 : vector<2x64xf32>
    %448 = math.exp %447 : vector<2x64xf32>
    %cst_86 = arith.constant 1.000000e+00 : f32
    %449 = vector.broadcast %cst_86 : f32 to vector<2x64xf32>
    %450 = arith.addf %449, %448 : vector<2x64xf32>
    %451 = arith.divf %449, %450 : vector<2x64xf32>
    %452 = vector.extract_strided_slice %439 {offsets = [0, 128], sizes = [2, 64], strides = [1, 1]} : vector<2x256xf32> to vector<2x64xf32>
    %453 = math.tanh %452 : vector<2x64xf32>
    %454 = vector.extract_strided_slice %439 {offsets = [0, 192], sizes = [2, 64], strides = [1, 1]} : vector<2x256xf32> to vector<2x64xf32>
    %455 = arith.negf %454 : vector<2x64xf32>
    %456 = math.exp %455 : vector<2x64xf32>
    %cst_87 = arith.constant 1.000000e+00 : f32
    %457 = vector.broadcast %cst_87 : f32 to vector<2x64xf32>
    %458 = arith.addf %457, %456 : vector<2x64xf32>
    %459 = arith.divf %457, %458 : vector<2x64xf32>
    %460 = arith.mulf %451, %430 : vector<2x64xf32>
    %461 = arith.mulf %445, %453 : vector<2x64xf32>
    %462 = arith.addf %460, %461 : vector<2x64xf32>
    %463 = math.tanh %462 : vector<2x64xf32>
    %464 = arith.mulf %459, %463 : vector<2x64xf32>
    %465 = vector.extract_strided_slice %236 {offsets = [14, 0], sizes = [2, 256], strides = [1, 1]} : vector<16x256xf32> to vector<2x256xf32>
    %466 = vector.extract_strided_slice %238 {offsets = [0, 0], sizes = [2, 256], strides = [1, 1]} : vector<16x256xf32> to vector<2x256xf32>
    %467 = arith.addf %465, %466 : vector<2x256xf32>
    %468 = vector.broadcast %239 : vector<1x256xf32> to vector<2x256xf32>
    %469 = arith.addf %467, %468 : vector<2x256xf32>
    %cst_88 = arith.constant dense<0.000000e+00> : vector<2x256xf32>
    %470 = tpu.matmul %464, %240, %cst_88 {dimension_numbers = #tpu.dot_dimension_numbers<[1], [0], [0], [1], [0, 0, 1, 1], [], []>} : vector<2x64xf32>, vector<64x256xf32>, vector<2x256xf32> -> vector<2x256xf32>
    %471 = arith.addf %469, %470 : vector<2x256xf32>
    %472 = vector.extract_strided_slice %471 {offsets = [0, 0], sizes = [2, 64], strides = [1, 1]} : vector<2x256xf32> to vector<2x64xf32>
    %473 = arith.negf %472 : vector<2x64xf32>
    %474 = math.exp %473 : vector<2x64xf32>
    %cst_89 = arith.constant 1.000000e+00 : f32
    %475 = vector.broadcast %cst_89 : f32 to vector<2x64xf32>
    %476 = arith.addf %475, %474 : vector<2x64xf32>
    %477 = arith.divf %475, %476 : vector<2x64xf32>
    %478 = vector.extract_strided_slice %471 {offsets = [0, 64], sizes = [2, 64], strides = [1, 1]} : vector<2x256xf32> to vector<2x64xf32>
    %479 = arith.negf %478 : vector<2x64xf32>
    %480 = math.exp %479 : vector<2x64xf32>
    %cst_90 = arith.constant 1.000000e+00 : f32
    %481 = vector.broadcast %cst_90 : f32 to vector<2x64xf32>
    %482 = arith.addf %481, %480 : vector<2x64xf32>
    %483 = arith.divf %481, %482 : vector<2x64xf32>
    %484 = vector.extract_strided_slice %471 {offsets = [0, 128], sizes = [2, 64], strides = [1, 1]} : vector<2x256xf32> to vector<2x64xf32>
    %485 = math.tanh %484 : vector<2x64xf32>
    %486 = vector.extract_strided_slice %471 {offsets = [0, 192], sizes = [2, 64], strides = [1, 1]} : vector<2x256xf32> to vector<2x64xf32>
    %487 = arith.negf %486 : vector<2x64xf32>
    %488 = math.exp %487 : vector<2x64xf32>
    %cst_91 = arith.constant 1.000000e+00 : f32
    %489 = vector.broadcast %cst_91 : f32 to vector<2x64xf32>
    %490 = arith.addf %489, %488 : vector<2x64xf32>
    %491 = arith.divf %489, %490 : vector<2x64xf32>
    %492 = arith.mulf %483, %462 : vector<2x64xf32>
    %493 = arith.mulf %477, %485 : vector<2x64xf32>
    %494 = arith.addf %492, %493 : vector<2x64xf32>
    %495 = math.tanh %494 : vector<2x64xf32>
    %496 = arith.mulf %491, %495 : vector<2x64xf32>
    %c0_92 = arith.constant 0 : index
    %c0_93 = arith.constant 0 : index
    %497 = vector.load %arg6[%c0_92, %c0_93] : memref<64x64xf32, #tpu.memory_space<vmem>>, vector<64x64xf32>
    %cst_94 = arith.constant dense<0.000000e+00> : vector<2x64xf32>
    %498 = tpu.matmul %496, %497, %cst_94 {dimension_numbers = #tpu.dot_dimension_numbers<[1], [0], [0], [1], [0, 0, 1, 1], [], []>} : vector<2x64xf32>, vector<64x64xf32>, vector<2x64xf32> -> vector<2x64xf32>
    %c0_95 = arith.constant 0 : index
    %c0_96 = arith.constant 0 : index
    %499 = vector.load %arg7[%c0_95, %c0_96] : memref<1x64xf32, #tpu.memory_space<vmem>>, vector<1x64xf32>
    %500 = vector.broadcast %499 : vector<1x64xf32> to vector<2x64xf32>
    %501 = arith.addf %498, %500 : vector<2x64xf32>
    %cst_97 = arith.constant 0.000000e+00 : f32
    %502 = vector.broadcast %cst_97 : f32 to vector<2x64xf32>
    %503 = arith.maximumf %501, %502 : vector<2x64xf32>
    %c0_98 = arith.constant 0 : index
    %c0_99 = arith.constant 0 : index
    %504 = vector.load %arg8[%c0_98, %c0_99] : memref<64x5xf32, #tpu.memory_space<vmem>>, vector<64x5xf32>
    %cst_100 = arith.constant dense<0.000000e+00> : vector<2x5xf32>
    %505 = tpu.matmul %503, %504, %cst_100 {dimension_numbers = #tpu.dot_dimension_numbers<[1], [0], [0], [1], [0, 0, 1, 1], [], []>} : vector<2x64xf32>, vector<64x5xf32>, vector<2x5xf32> -> vector<2x5xf32>
    %c0_101 = arith.constant 0 : index
    %c0_102 = arith.constant 0 : index
    %506 = vector.load %arg9[%c0_101, %c0_102] : memref<1x5xf32, #tpu.memory_space<vmem>>, vector<1x5xf32>
    %507 = vector.broadcast %506 : vector<1x5xf32> to vector<2x5xf32>
    %508 = arith.addf %505, %507 : vector<2x5xf32>
    %c0_103 = arith.constant 0 : index
    %c0_104 = arith.constant 0 : index
    %509 = vector.load %arg10[%c0_103, %c0_104] : memref<2x5xf32, #tpu.memory_space<vmem>>, vector<2x5xf32>
    tpu.vector_store %arg10[%c0_103, %c0_104], %508 {strides = array<i32>} : memref<2x5xf32, #tpu.memory_space<vmem>>, vector<2x5xf32>,
    return
  }
}

</mosaic_0001>

<bundles_post_ra>
// kernel: lstm_model_forward.1
= control target key start
LH: loop header
LB: loop body
LE: loop exit
PB: predicated region body
PF: predicated region fallthrough
CT: control target
= control target key end

     0   :  { %v3046_v7 = vmov 0.0   ;;  %s3739_s0 = inlined_call_operand.vmem [shape: f32[8,2,256], index: 0, kind: input, shape index: {}]   ;;  %s3740_s1 = inlined_call_operand.vmem [shape: f32[64,256], index: 1, kind: input, shape index: {}]   ;;  %s3741_s2 = inlined_call_operand.vmem [shape: f32[64,256], index: 2, kind: input, shape index: {}]   ;;  %s3742_s3 = inlined_call_operand.vmem [shape: f32[64,256], index: 3, kind: input, shape index: {}]   ;;  %s3743_s4 = inlined_call_operand.vmem [shape: f32[1,256], index: 4, kind: input, shape index: {}]   ;;  %s3744_s5 = inlined_call_operand.vmem [shape: f32[64,256], index: 5, kind: input, shape index: {}]   ;;  %s3745_s6 = inlined_call_operand.vmem [shape: f32[64,64], index: 6, kind: input, shape index: {}]   ;;  %s3746_s7 = inlined_call_operand.vmem [shape: f32[1,64], index: 7, kind: input, shape index: {}]   ;;  %s3747_s8 = inlined_call_operand.vmem [shape: f32[64,5], index: 8, kind: input, shape index: {}]   ;;  %s3748_s9 = inlined_call_operand.vmem [shape: f32[1,5], index: 9, kind: input, shape index: {}]   ;;  %s3749_s10 = inlined_call_operand.hbm [shape: f32[2,5], index: 10, kind: output, shape index: {}]  }
   0x1   :  { %v37_v0 = vld [vmem:[%s3740_s1 + $0x8] sm:$0xff]  ;;  %v39_v1 = vld [vmem:[%s3740_s1 + $0x18] sm:$0xff]  ;;  %v36_v2 = vld [vmem:[%s3740_s1] sm:$0xff]  ;;  %121 = vmatprep.mubr.f32.mxu0 %v3046_v7  ;;  %242 = vmatprep.mubr.f32.mxu1 %v3046_v7 }
   0x2   :  { %v3116_v3 = vpack.c.bf16 %v39_v1, %v37_v0  ;;  %v38_v4 = vld [vmem:[%s3740_s1 + $0x10] sm:$0xff]  ;;  %v41_v5 = vld [vmem:[%s3740_s1 + $0x28] sm:$0xff]  ;;  %v43_v6 = vld [vmem:[%s3740_s1 + $0x38] sm:$0xff] }
   0x3   :  { %v3129_v8 = vpack.c.bf16 %v38_v4, %v36_v2  ;;  %v3131_v9 = vpack.c.bf16 %v43_v6, %v41_v5  ;;  %v40_v10 = vld [vmem:[%s3740_s1 + $0x20] sm:$0xff]  ;;  %v42_v11 = vld [vmem:[%s3740_s1 + $0x30] sm:$0xff]  ;;  %v45_v12 = vld [vmem:[%s3740_s1 + $0x48] sm:$0xff] }
   0x4   :  { %2513 = vmatprep.subr.bf16.mxu0 %v3116_v3  ;;  %v47_v13 = vld [vmem:[%s3740_s1 + $0x58] sm:$0xff]  ;;  %2529 = vmatprep.subr.bf16.mxu1 %v3116_v3  ;;  %v3148_v14 = vpack.c.bf16 %v42_v11, %v40_v10  ;;  %v44_v16 = vld [vmem:[%s3740_s1 + $0x40] sm:$0xff]  ;;  %v46_v17 = vld [vmem:[%s3740_s1 + $0x50] sm:$0xff] }
   0x5   :  { %2515 = vmatpush1.bf16.msra.mxu0 %v3129_v8  ;;  %2531 = vmatpush1.bf16.msra.mxu1 %v3129_v8  ;;  %v3152_v15 = vpack.c.bf16 %v47_v13, %v45_v12 }
   0x6   :  { %2517 = vmatprep.subr.bf16.mxu0 %v3131_v9  ;;  %2533 = vmatprep.subr.bf16.mxu1 %v3131_v9 }
   0x7   :  { %15 = vsyncpa [#allocation3], 0  ;;  %v49_v18 = vld [vmem:[%s3740_s1 + $0x68] sm:$0xff]  ;;  %v51_v19 = vld [vmem:[%s3740_s1 + $0x78] sm:$0xff]  ;;  %v3168_v20 = vpack.c.bf16 %v46_v17, %v44_v16  ;;  %v3047_v25 = vmov 1983009808   ;;  %v134_v27 = vlaneseq }
   0x8   :  { %v3172_v21 = vpack.c.bf16 %v51_v19, %v49_v18  ;;  %v48_v22 = vld [vmem:[%s3740_s1 + $0x60] sm:$0xff]  ;;  %v50_v23 = vld [vmem:[%s3740_s1 + $0x70] sm:$0xff]  ;;  %v132_v26 = vunpack.c.l.s4 %v3047_v25  ;;  %s3048_s26 = smov 64   ;;  %vm53_vm0 = vcmask 523264   ;;  %vm1077_vm1 = vcmask 1041408   ;;  %s3051_s18 = smov [#allocation2]  }
   0x9   :  { %2519 = vmatpush1.bf16.msra.mxu0 %v3148_v14  ;;  %2535 = vmatpush1.bf16.msra.mxu1 %v3148_v14  ;;  %v3182_v24 = vpack.c.bf16 %v50_v23, %v48_v22  ;;  %v3201_v29 = vshrl.u32 %v134_v27, 7  ;;  %v52_v34 = vld [vmem:[%s3739_s0] sm:$0xf]  ;;  %v2397_v59 = vld [vmem:[%s3739_s0 + $0x4] sm:$0xf]  ;;  %vm1079_vm2 = vcmask 1043456  }
   0xa   :  { %2521 = vmatprep.subr.bf16.mxu0 %v3152_v15  ;;  %2537 = vmatprep.subr.bf16.mxu1 %v3152_v15  ;;  %v133_v28 = vunpack.c.0.s8 %v132_v26  ;;  %vm1081_vm3 = vcmask 1045504   ;;  %vm3050_vm4 = vmmov 0   ;;  %s2387_s19 = sshll.u32 %s3051_s18, 4  ;;  %vm2379_vm5 = vcmask 33792   ;;  %s2388_s19 = int_to_ptr.vmem [resolvable:$true] %s2387_s19 }
   0xb   :  { %p3027_p1 = scmp.lt.s32.totalorder %s2388_s19, %s2388_s19 }
   0xc   :  { %v3204_v31 = vsub.s32 %v133_v28, %v3201_v29 }
   0xd   :  { %2523 = vmatpush1.bf16.msra.mxu0 %v3168_v20  ;;  %2539 = vmatpush1.bf16.msra.mxu1 %v3168_v20 }
   0xe   :  { %2525 = vmatprep.subr.bf16.mxu0 %v3172_v21  ;;  %2541 = vmatprep.subr.bf16.mxu1 %v3172_v21 }
  0x11   :  { %2527 = vmatpush1.bf16.msra.mxu0 %v3182_v24  ;;  %2543 = vmatpush1.bf16.msra.mxu1 %v3182_v24 }
  0x12   :  { %2545 = vmatprep.subr.bf16.mxu0 %v3116_v3  ;;  %2561 = vmatprep.subr.bf16.mxu1 %v3116_v3 }
  0x14   :  { %122 = vmatmul.mubr.f32.vlgmr.msra.gmra.mrb[0].mxu0 %v3046_v7 }
  0x15   :  { %2547 = vmatpush1.bf16.msra.mxu0 %v3129_v8  ;;  %363 = vmatprep.mubr.f32.mxu0 %v3046_v7 }
  0x16   :  { %2549 = vmatprep.subr.bf16.mxu0 %v3131_v9 }
  0x19   :  { %2551 = vmatpush1.bf16.msra.mxu0 %v3148_v14 }
  0x1a   :  { %2553 = vmatprep.subr.bf16.mxu0 %v3152_v15 }
  0x1d   :  { %2555 = vmatpush1.bf16.msra.mxu0 %v3168_v20 }
  0x1e   :  { %2557 = vmatprep.subr.bf16.mxu0 %v3172_v21 }
  0x21   :  { %2559 = vmatpush1.bf16.msra.mxu0 %v3182_v24 }
  0x22   :  { %2577 = vmatprep.subr.bf16.mxu0 %v3116_v3 }
  0xe7   :  { %v123_v30 = vpop.f32.mrb[0].mxu0 }
  0xe8   :  { %v125_v32 = vpop.f32.mrb[1].mxu0 }
  0xe9   :  { %v130_v33 = vcombine.low %v123_v30, %v125_v32  ;;  %v2401_v30 = vld [vmem:[%s3739_s0 + $0x8] sm:$0xf] }
  0xeb   :  { %v137_v35 = vrot.slane %v130_v33, %v3204_v31 }
  0xed   :  { %v139_v36 = vadd.f32 %v137_v35, %v52_v34 }
  0xef   :  { %v2395_v37 = vmul.f32 -1.442695, %v139_v36  ;;  %v147_v38 = vrot.slane %v139_v36, 2 }
  0xf1   :  { %2830 = vpow2.f32 %v2395_v37 }
  0xf2   :  { %2832 = vtanh.f32 %v147_v38 }
  0xfb   :  { %v2831_v39 = vpop.eup %2830 }
  0xfc   :  { %v143_v40 = vadd.f32 1.0, %v2831_v39  ;;  %v2833_v41 = vpop.eup %2832 }
  0xfe   :  { %2834 = vrcp.f32 %v143_v40 }
 0x108   :  { %v2835_v42 = vpop.eup %2834 }
 0x109   :  { %v161_v43 = vmul.f32 %v2835_v42, %v2833_v41  ;;  %v160_v44 = vmul.f32 0.0, %v2835_v42 }
 0x10b   :  { %163 = vrot.lane.b32.xlu0 %v161_v43, %s3048_s26 }
 0x10f   :  { %150 = vrot.lane.b32.xlu0 %v139_v36, %s3048_s26 }
 0x17d   :  { %v164_v45 = vpop.permute.xlu0 %163 }
 0x17e   :  { %v166_v46 = vadd.f32 %v164_v45, %v160_v44 }
 0x180   :  { %2836 = vtanh.f32 %v166_v46 }
 0x181   :  { %v151_v48 = vpop.permute.xlu0 %150 }
 0x182   :  { %v152_v49 = vrot.slane %v151_v48, 2 }
 0x184   :  { %v2396_v50 = vmul.f32 -1.442695, %v152_v49 }
 0x186   :  { %2838 = vpow2.f32 %v2396_v50 }
 0x18a   :  { %v2837_v47 = vpop.eup %2836 }
 0x18b   :  { %169 = vrot.lane.b32.xlu1 %v2837_v47, %s3048_s26 }
 0x190   :  { %v2839_v51 = vpop.eup %2838 }
 0x191   :  { %v157_v52 = vadd.f32 1.0, %v2839_v51 }
 0x193   :  { %2840 = vrcp.f32 %v157_v52 }
 0x19d   :  { %v2841_v53 = vpop.eup %2840 }
 0x1fd   :  { %v170_v54 = vpop.permute.xlu1 %169 }
 0x1fe   :  { %v3213_v55 = vmul.f32 %v2841_v53, %v170_v54 }
 0x200   :  { %2398 = vmatmul.mubr.msk.f32.vlgmr.msra.gmra.mrb[0].mxu1 %vm53_vm0, %v3213_v55 }
 0x201   :  { %2563 = vmatpush1.bf16.msra.mxu1 %v3129_v8  ;;  %484 = vmatprep.mubr.f32.mxu1 %v3046_v7 }
 0x202   :  { %2565 = vmatprep.subr.bf16.mxu1 %v3131_v9 }
 0x205   :  { %2567 = vmatpush1.bf16.msra.mxu1 %v3148_v14 }
 0x206   :  { %2569 = vmatprep.subr.bf16.mxu1 %v3152_v15 }
 0x209   :  { %2571 = vmatpush1.bf16.msra.mxu1 %v3168_v20 }
 0x20a   :  { %2573 = vmatprep.subr.bf16.mxu1 %v3172_v21 }
 0x20d   :  { %2575 = vmatpush1.bf16.msra.mxu1 %v3182_v24 }
 0x20e   :  { %2593 = vmatprep.subr.bf16.mxu1 %v3116_v3 }
 0x2d3   :  { %v244_v56 = vpop.f32.mrb[0].mxu1 }
 0x2d4   :  { %v246_v57 = vpop.f32.mrb[1].mxu1 }
 0x2d5   :  { %v251_v58 = vcombine.low %v244_v56, %v246_v57 }
 0x2d7   :  { %v258_v60 = vrot.slane %v251_v58, %v3204_v31 }
 0x2d9   :  { %v260_v61 = vadd.f32 %v2397_v59, %v258_v60 }
 0x2db   :  { %271 = vrot.lane.b32.xlu0 %v260_v61, %s3048_s26  ;;  %v2399_v62 = vmul.f32 -1.442695, %v260_v61  ;;  %v268_v63 = vrot.slane %v260_v61, 2 }
 0x2dd   :  { %2842 = vpow2.f32 %v2399_v62 }
 0x2de   :  { %2844 = vtanh.f32 %v268_v63 }
 0x2e7   :  { %v2843_v0 = vpop.eup %2842 }
 0x2e8   :  { %v264_v1 = vadd.f32 1.0, %v2843_v0  ;;  %v2845_v2 = vpop.eup %2844 }
 0x2ea   :  { %2846 = vrcp.f32 %v264_v1 }
 0x2f4   :  { %v2847_v4 = vpop.eup %2846 }
 0x2f5   :  { %v282_v5 = vmul.f32 %v2847_v4, %v2845_v2  ;;  %v281_v6 = vmul.f32 %v2847_v4, %v166_v46 }
 0x2f7   :  { %284 = vrot.lane.b32.xlu1 %v282_v5, %s3048_s26 }
 0x34d   :  { %v272_v13 = vpop.permute.xlu0 %271 }
 0x34e   :  { %v273_v16 = vrot.slane %v272_v13, 2 }
 0x350   :  { %v2400_v17 = vmul.f32 -1.442695, %v273_v16 }
 0x369   :  { %v285_v10 = vpop.permute.xlu1 %284 }
 0x36a   :  { %v287_v11 = vadd.f32 %v285_v10, %v281_v6 }
 0x36c   :  { %2848 = vtanh.f32 %v287_v11 }
 0x36d   :  { %2850 = vpow2.f32 %v2400_v17 }
 0x376   :  { %v2849_v12 = vpop.eup %2848 }
 0x377   :  { %290 = vrot.lane.b32.xlu1 %v2849_v12, %s3048_s26  ;;  %v2851_v18 = vpop.eup %2850 }
 0x378   :  { %v278_v19 = vadd.f32 1.0, %v2851_v18 }
 0x37a   :  { %2852 = vrcp.f32 %v278_v19 }
 0x384   :  { %v2853_v22 = vpop.eup %2852 }
 0x3e9   :  { %v291_v23 = vpop.permute.xlu1 %290 }
 0x3ea   :  { %v293_v25 = vmul.f32 %v2853_v22, %v291_v23 }
 0x3ec   :  { %2402 = vmatmul.mubr.msk.f32.vlgmr.msra.gmra.mrb[2].mxu0 %vm53_vm0, %v293_v25  ;;  %v1020_v50 = vcombine.low %v293_v25, %v293_v25 }
 0x3ed   :  { %2579 = vmatpush1.bf16.msra.mxu0 %v3129_v8  ;;  %605 = vmatprep.mubr.f32.mxu0 %v3046_v7 }
 0x3ee   :  { %2581 = vmatprep.subr.bf16.mxu0 %v3131_v9  ;;  %v1027_v54 = vrot.slane %v1020_v50, %v3204_v31 }
 0x3f0   :  { %v1078_v58 = vsel %vm1077_vm1, %v3213_v55, %v1027_v54  ;;  %v2405_v55 = vld [vmem:[%s3739_s0 + $0xc] sm:$0xf] }
 0x3f1   :  { %2583 = vmatpush1.bf16.msra.mxu0 %v3148_v14 }
 0x3f2   :  { %2585 = vmatprep.subr.bf16.mxu0 %v3152_v15 }
 0x3f5   :  { %2587 = vmatpush1.bf16.msra.mxu0 %v3168_v20 }
 0x3f6   :  { %2589 = vmatprep.subr.bf16.mxu0 %v3172_v21 }
 0x3f9   :  { %2591 = vmatpush1.bf16.msra.mxu0 %v3182_v24 }
 0x3fa   :  { %2609 = vmatprep.subr.bf16.mxu0 %v3116_v3 }
 0x4bf   :  { %v365_v26 = vpop.f32.mrb[2].mxu0 }
 0x4c0   :  { %v367_v27 = vpop.f32.mrb[3].mxu0 }
 0x4c1   :  { %v372_v28 = vcombine.low %v365_v26, %v367_v27 }
 0x4c3   :  { %v379_v32 = vrot.slane %v372_v28, %v3204_v31 }
 0x4c5   :  { %v381_v33 = vadd.f32 %v2401_v30, %v379_v32 }
 0x4c7   :  { %392 = vrot.lane.b32.xlu1 %v381_v33, %s3048_s26  ;;  %v2403_v34 = vmul.f32 -1.442695, %v381_v33  ;;  %v389_v35 = vrot.slane %v381_v33, 2 }
 0x4c9   :  { %2854 = vpow2.f32 %v2403_v34 }
 0x4ca   :  { %2856 = vtanh.f32 %v389_v35 }
 0x4d3   :  { %v2855_v36 = vpop.eup %2854 }
 0x4d4   :  { %v385_v37 = vadd.f32 1.0, %v2855_v36  ;;  %v2857_v38 = vpop.eup %2856 }
 0x4d6   :  { %2858 = vrcp.f32 %v385_v37  ;;  %v2409_v37 = vld [vmem:[%s3739_s0 + $0x10] sm:$0xf] }
 0x4e0   :  { %v2859_v39 = vpop.eup %2858 }
 0x4e1   :  { %v403_v40 = vmul.f32 %v2859_v39, %v2857_v38  ;;  %v402_v41 = vmul.f32 %v2859_v39, %v287_v11 }
 0x4e3   :  { %405 = vrot.lane.b32.xlu0 %v403_v40, %s3048_s26 }
 0x539   :  { %v393_v45 = vpop.permute.xlu1 %392 }
 0x53a   :  { %v394_v46 = vrot.slane %v393_v45, 2 }
 0x53c   :  { %v2404_v47 = vmul.f32 -1.442695, %v394_v46 }
 0x555   :  { %v406_v42 = vpop.permute.xlu0 %405 }
 0x556   :  { %v408_v43 = vadd.f32 %v406_v42, %v402_v41 }
 0x558   :  { %2860 = vtanh.f32 %v408_v43 }
 0x559   :  { %2862 = vpow2.f32 %v2404_v47 }
 0x562   :  { %v2861_v44 = vpop.eup %2860 }
 0x563   :  { %411 = vrot.lane.b32.xlu0 %v2861_v44, %s3048_s26  ;;  %v2863_v48 = vpop.eup %2862 }
 0x564   :  { %v399_v49 = vadd.f32 1.0, %v2863_v48 }
 0x566   :  { %2864 = vrcp.f32 %v399_v49 }
 0x570   :  { %v2865_v51 = vpop.eup %2864 }
 0x5d5   :  { %v412_v52 = vpop.permute.xlu0 %411 }
 0x5d6   :  { %v414_v53 = vmul.f32 %v2865_v51, %v412_v52 }
 0x5d8   :  { %v1035_v56 = vrot.slane %v414_v53, %v3204_v31  ;;  %2406 = vmatmul.mubr.msk.f32.vlgmr.msra.gmra.mrb[2].mxu1 %vm53_vm0, %v414_v53 }
 0x5d9   :  { %2595 = vmatpush1.bf16.msra.mxu1 %v3129_v8  ;;  %726 = vmatprep.mubr.f32.mxu1 %v3046_v7 }
 0x5da   :  { %v1036_v57 = vcombine.low %v1035_v56, %v1035_v56  ;;  %2597 = vmatprep.subr.bf16.mxu1 %v3131_v9 }
 0x5dc   :  { %v1080_v59 = vsel %vm1079_vm2, %v1078_v58, %v1036_v57 }
 0x5dd   :  { %2599 = vmatpush1.bf16.msra.mxu1 %v3148_v14 }
 0x5de   :  { %2601 = vmatprep.subr.bf16.mxu1 %v3152_v15 }
 0x5e1   :  { %2603 = vmatpush1.bf16.msra.mxu1 %v3168_v20 }
 0x5e2   :  { %2605 = vmatprep.subr.bf16.mxu1 %v3172_v21 }
 0x5e5   :  { %2607 = vmatpush1.bf16.msra.mxu1 %v3182_v24 }
 0x5e6   :  { %2625 = vmatprep.subr.bf16.mxu1 %v3116_v3 }
 0x6ab   :  { %v486_v60 = vpop.f32.mrb[2].mxu1 }
 0x6ac   :  { %v488_v61 = vpop.f32.mrb[3].mxu1 }
 0x6ad   :  { %v493_v62 = vcombine.low %v486_v60, %v488_v61 }
 0x6af   :  { %v500_v63 = vrot.slane %v493_v62, %v3204_v31 }
 0x6b1   :  { %v502_v0 = vadd.f32 %v2405_v55, %v500_v63 }
 0x6b3   :  { %513 = vrot.lane.b32.xlu0 %v502_v0, %s3048_s26  ;;  %v2407_v1 = vmul.f32 -1.442695, %v502_v0  ;;  %v510_v2 = vrot.slane %v502_v0, 2 }
 0x6b5   :  { %2866 = vpow2.f32 %v2407_v1 }
 0x6b6   :  { %2868 = vtanh.f32 %v510_v2 }
 0x6bf   :  { %v2867_v4 = vpop.eup %2866 }
 0x6c0   :  { %v506_v5 = vadd.f32 1.0, %v2867_v4  ;;  %v2869_v3 = vpop.eup %2868  ;;  %v1087_v4 = vld [vmem:[%s3741_s2 + $0x8] sm:$0xff] }
 0x6c2   :  { %2870 = vrcp.f32 %v506_v5  ;;  %v1089_v5 = vld [vmem:[%s3741_s2 + $0x18] sm:$0xff] }
 0x6cc   :  { %v2871_v6 = vpop.eup %2870 }
 0x6cd   :  { %v524_v10 = vmul.f32 %v2871_v6, %v2869_v3  ;;  %v523_v11 = vmul.f32 %v2871_v6, %v408_v43  ;;  %v2640_v6 = vpack.c.bf16 %v1089_v5, %v1087_v4 }
 0x6cf   :  { %526 = vrot.lane.b32.xlu1 %v524_v10, %s3048_s26 }
 0x725   :  { %v514_v17 = vpop.permute.xlu0 %513 }
 0x726   :  { %v515_v18 = vrot.slane %v514_v17, 2 }
 0x728   :  { %v2408_v19 = vmul.f32 -1.442695, %v515_v18  ;;  %v1086_v18 = vld [vmem:[%s3741_s2] sm:$0xff] }
 0x741   :  { %v527_v12 = vpop.permute.xlu1 %526 }
 0x742   :  { %v529_v13 = vadd.f32 %v527_v12, %v523_v11 }
 0x744   :  { %2872 = vtanh.f32 %v529_v13 }
 0x745   :  { %2874 = vpow2.f32 %v2408_v19  ;;  %v1088_v19 = vld [vmem:[%s3741_s2 + $0x10] sm:$0xff] }
 0x74e   :  { %v2873_v16 = vpop.eup %2872 }
 0x74f   :  { %532 = vrot.lane.b32.xlu1 %v2873_v16, %s3048_s26  ;;  %v2875_v22 = vpop.eup %2874 }
 0x750   :  { %v520_v23 = vadd.f32 1.0, %v2875_v22  ;;  %v1091_v22 = vld [vmem:[%s3741_s2 + $0x28] sm:$0xff] }
 0x752   :  { %2876 = vrcp.f32 %v520_v23  ;;  %v1093_v23 = vld [vmem:[%s3741_s2 + $0x38] sm:$0xff] }
 0x75c   :  { %v2877_v25 = vpop.eup %2876 }
 0x7c1   :  { %v533_v26 = vpop.permute.xlu1 %532 }
 0x7c2   :  { %v535_v27 = vmul.f32 %v2877_v25, %v533_v26 }
 0x7c4   :  { %v1038_v28 = vcombine.low %v535_v27, %v535_v27  ;;  %2410 = vmatmul.mubr.msk.f32.vlgmr.msra.gmra.mrb[4].mxu0 %vm53_vm0, %v535_v27  ;;  %v2642_v27 = vpack.c.bf16 %v1088_v19, %v1086_v18 }
 0x7c5   :  { %2611 = vmatpush1.bf16.msra.mxu0 %v3129_v8  ;;  %847 = vmatprep.mubr.f32.mxu0 %v3046_v7 }
 0x7c6   :  { %v1045_v30 = vrot.slane %v1038_v28, %v3204_v31  ;;  %2613 = vmatprep.subr.bf16.mxu0 %v3131_v9 }
 0x7c8   :  { %v1046_v32 = vcombine.low %v1045_v30, %v1045_v30  ;;  %v2644_v30 = vpack.c.bf16 %v1093_v23, %v1091_v22  ;;  %v1189_v22 = vld [vmem:[%s3742_s3 + $0x20] sm:$0xff]  ;;  %v1191_v23 = vld [vmem:[%s3742_s3 + $0x30] sm:$0xff] }
 0x7c9   :  { %2615 = vmatpush1.bf16.msra.mxu0 %v3148_v14 }
 0x7ca   :  { %2617 = vmatprep.subr.bf16.mxu0 %v3152_v15  ;;  %v3280_v33 = vsel %vm1081_vm3, %v1080_v59, %v1046_v32  ;;  %v1090_v32 = vld [vmem:[%s3741_s2 + $0x20] sm:$0xff] }
 0x7cd   :  { %2619 = vmatpush1.bf16.msra.mxu0 %v3168_v20 }
 0x7ce   :  { %2621 = vmatprep.subr.bf16.mxu0 %v3172_v21 }
 0x7d1   :  { %2623 = vmatpush1.bf16.msra.mxu0 %v3182_v24 }
 0x7d2   :  { %2641 = vmatprep.subr.bf16.mxu0 %v2640_v6  ;;  %v1187_v6 = vld [vmem:[%s3742_s3 + $0x10] sm:$0xff] }
 0x897   :  { %v607_v34 = vpop.f32.mrb[4].mxu0 }
 0x898   :  { %v609_v35 = vpop.f32.mrb[5].mxu0 }
 0x899   :  { %v614_v36 = vcombine.low %v607_v34, %v609_v35  ;;  %v1092_v34 = vld [vmem:[%s3741_s2 + $0x30] sm:$0xff]  ;;  %v1095_v35 = vld [vmem:[%s3741_s2 + $0x48] sm:$0xff] }
 0x89b   :  { %v621_v38 = vrot.slane %v614_v36, %v3204_v31  ;;  %v1097_v36 = vld [vmem:[%s3741_s2 + $0x58] sm:$0xff] }
 0x89d   :  { %v623_v39 = vadd.f32 %v2409_v37, %v621_v38  ;;  %v2646_v37 = vpack.c.bf16 %v1092_v34, %v1090_v32  ;;  %v2648_v38 = vpack.c.bf16 %v1097_v36, %v1095_v35  ;;  %v1193_v35 = vld [vmem:[%s3742_s3 + $0x40] sm:$0xff]  ;;  %v1195_v36 = vld [vmem:[%s3742_s3 + $0x50] sm:$0xff] }
 0x89f   :  { %634 = vrot.lane.b32.xlu1 %v623_v39, %s3048_s26  ;;  %v2411_v40 = vmul.f32 -1.442695, %v623_v39  ;;  %v631_v41 = vrot.slane %v623_v39, 2  ;;  %v1094_v39 = vld [vmem:[%s3741_s2 + $0x40] sm:$0xff] }
 0x8a1   :  { %2878 = vpow2.f32 %v2411_v40  ;;  %v1096_v40 = vld [vmem:[%s3741_s2 + $0x50] sm:$0xff] }
 0x8a2   :  { %2880 = vtanh.f32 %v631_v41  ;;  %v1099_v41 = vld [vmem:[%s3741_s2 + $0x68] sm:$0xff] }
 0x8ab   :  { %v2879_v42 = vpop.eup %2878 }
 0x8ac   :  { %v627_v43 = vadd.f32 1.0, %v2879_v42  ;;  %v2881_v44 = vpop.eup %2880  ;;  %v1101_v42 = vld [vmem:[%s3741_s2 + $0x78] sm:$0xff] }
 0x8ae   :  { %2882 = vrcp.f32 %v627_v43  ;;  %v2650_v43 = vpack.c.bf16 %v1096_v40, %v1094_v39 }
 0x8b8   :  { %v2883_v45 = vpop.eup %2882 }
 0x8b9   :  { %v645_v46 = vmul.f32 %v2883_v45, %v2881_v44  ;;  %v644_v47 = vmul.f32 %v2883_v45, %v529_v13  ;;  %v2652_v44 = vpack.c.bf16 %v1101_v42, %v1099_v41  ;;  %v1098_v45 = vld [vmem:[%s3741_s2 + $0x60] sm:$0xff]  ;;  %v2666_v41 = vpack.c.bf16 %v1195_v36, %v1193_v35 }
 0x8bb   :  { %647 = vrot.lane.b32.xlu0 %v645_v46, %s3048_s26  ;;  %v1100_v46 = vld [vmem:[%s3741_s2 + $0x70] sm:$0xff] }
 0x911   :  { %v635_v51 = vpop.permute.xlu1 %634 }
 0x912   :  { %v636_v52 = vrot.slane %v635_v51, 2  ;;  %v2417_v51 = vld [vmem:[%s3739_s0 + $0x18] sm:$0xf] }
 0x914   :  { %v2412_v53 = vmul.f32 -1.442695, %v636_v52 }
 0x92d   :  { %v648_v48 = vpop.permute.xlu0 %647 }
 0x92e   :  { %v650_v49 = vadd.f32 %v648_v48, %v644_v47  ;;  %v2654_v47 = vpack.c.bf16 %v1100_v46, %v1098_v45 }
 0x930   :  { %2884 = vtanh.f32 %v650_v49 }
 0x931   :  { %2886 = vpow2.f32 %v2412_v53 }
 0x93a   :  { %v2885_v50 = vpop.eup %2884 }
 0x93b   :  { %653 = vrot.lane.b32.xlu0 %v2885_v50, %s3048_s26  ;;  %v2887_v54 = vpop.eup %2886 }
 0x93c   :  { %v641_v56 = vadd.f32 1.0, %v2887_v54 }
 0x93e   :  { %2888 = vrcp.f32 %v641_v56 }
 0x948   :  { %v2889_v57 = vpop.eup %2888 }
 0x9ad   :  { %v654_v58 = vpop.permute.xlu0 %653 }
 0x9ae   :  { %v3292_v59 = vmul.f32 %v2889_v57, %v654_v58 }
 0x9b0   :  { %2414 = vmatmul.mubr.msk.f32.vlgmr.msra.gmra.mrb[4].mxu1 %vm53_vm0, %v3292_v59 }
 0x9b1   :  { %2627 = vmatpush1.bf16.msra.mxu1 %v3129_v8  ;;  %968 = vmatprep.mubr.f32.mxu1 %v3046_v7  ;;  %v2413_v8 = vld [vmem:[%s3739_s0 + $0x14] sm:$0xf] }
 0x9b2   :  { %2629 = vmatprep.subr.bf16.mxu1 %v3131_v9 }
 0x9b5   :  { %2631 = vmatpush1.bf16.msra.mxu1 %v3148_v14 }
 0x9b6   :  { %2633 = vmatprep.subr.bf16.mxu1 %v3152_v15 }
 0x9b9   :  { %2635 = vmatpush1.bf16.msra.mxu1 %v3168_v20 }
 0x9ba   :  { %2637 = vmatprep.subr.bf16.mxu1 %v3172_v21 }
 0x9bd   :  { %2639 = vmatpush1.bf16.msra.mxu1 %v3182_v24 }
 0xa83   :  { %v728_v60 = vpop.f32.mrb[4].mxu1 }
 0xa84   :  { %v730_v61 = vpop.f32.mrb[5].mxu1 }
 0xa85   :  { %v735_v62 = vcombine.low %v728_v60, %v730_v61 }
 0xa87   :  { %v742_v55 = vrot.slane %v735_v62, %v3204_v31 }
 0xa89   :  { %v744_v9 = vadd.f32 %v2413_v8, %v742_v55 }
 0xa8b   :  { %755 = vrot.lane.b32.xlu0 %v744_v9, %s3048_s26  ;;  %v2415_v14 = vmul.f32 -1.442695, %v744_v9  ;;  %v752_v15 = vrot.slane %v744_v9, 2 }
 0xa8d   :  { %2890 = vpow2.f32 %v2415_v14 }
 0xa8e   :  { %2892 = vtanh.f32 %v752_v15  ;;  %v1186_v15 = vld [vmem:[%s3742_s3 + $0x8] sm:$0xff] }
 0xa97   :  { %v2891_v20 = vpop.eup %2890 }
 0xa98   :  { %v748_v63 = vadd.f32 1.0, %v2891_v20  ;;  %v2893_v21 = vpop.eup %2892  ;;  %v1188_v20 = vld [vmem:[%s3742_s3 + $0x18] sm:$0xff] }
 0xa9a   :  { %2894 = vrcp.f32 %v748_v63 }
 0xaa4   :  { %v2895_v24 = vpop.eup %2894 }
 0xaa5   :  { %v766_v0 = vmul.f32 %v2895_v24, %v2893_v21  ;;  %v765_v1 = vmul.f32 %v2895_v24, %v650_v49  ;;  %v2656_v21 = vpack.c.bf16 %v1188_v20, %v1186_v15  ;;  %v1281_v15 = vld [vmem:[%s3744_s5 + $0x10] sm:$0xff] }
 0xaa7   :  { %768 = vrot.lane.b32.xlu1 %v766_v0, %s3048_s26  ;;  %2657 = vmatprep.subr.bf16.mxu1 %v2656_v21 }
 0xafd   :  { %v756_v11 = vpop.permute.xlu0 %755 }
 0xafe   :  { %v757_v12 = vrot.slane %v756_v11, 2  ;;  %v1190_v11 = vld [vmem:[%s3742_s3 + $0x28] sm:$0xff] }
 0xb00   :  { %v2416_v13 = vmul.f32 -1.442695, %v757_v12  ;;  %v1192_v12 = vld [vmem:[%s3742_s3 + $0x38] sm:$0xff] }
 0xb01   :  { %v2660_v19 = vpack.c.bf16 %v1192_v12, %v1190_v11  ;;  %v1287_v12 = vld [vmem:[%s3744_s5 + $0x40] sm:$0xff] }
 0xb19   :  { %v769_v2 = vpop.permute.xlu1 %768 }
 0xb1a   :  { %v3316_v3 = vadd.f32 %v769_v2, %v765_v1 }
 0xb1c   :  { %2896 = vtanh.f32 %v3316_v3 }
 0xb1d   :  { %2898 = vpow2.f32 %v2416_v13 }
 0xb26   :  { %v2897_v10 = vpop.eup %2896 }
 0xb27   :  { %774 = vrot.lane.b32.xlu1 %v2897_v10, %s3048_s26  ;;  %v2899_v16 = vpop.eup %2898 }
 0xb28   :  { %v762_v17 = vadd.f32 1.0, %v2899_v16 }
 0xb2a   :  { %2900 = vrcp.f32 %v762_v17 }
 0xb34   :  { %v2901_v25 = vpop.eup %2900 }
 0xb99   :  { %v775_v26 = vpop.permute.xlu1 %774 }
 0xb9a   :  { %v3332_v28 = vmul.f32 %v2901_v25, %v775_v26  ;;  %v1194_v26 = vld [vmem:[%s3742_s3 + $0x48] sm:$0xff] }
 0xb9c   :  { %2418 = vmatmul.mubr.msk.f32.vlgmr.msra.gmra.mrb[6].mxu0 %vm53_vm0, %v3332_v28  ;;  %v1048_v10 = vcombine.low %v3332_v28, %v3332_v28 }
 0xb9d   :  { %2643 = vmatpush1.bf16.msra.mxu0 %v2642_v27  ;;  %1172 = vmatprep.mubr.f32.mxu0 %v3046_v7  ;;  %v1196_v27 = vld [vmem:[%s3742_s3 + $0x58] sm:$0xff] }
 0xb9e   :  { %2645 = vmatprep.subr.bf16.mxu0 %v2644_v30  ;;  %v1055_v25 = vrot.slane %v1048_v10, %v3204_v31  ;;  %v2662_v30 = vpack.c.bf16 %v1191_v23, %v1189_v22  ;;  %v2664_v34 = vpack.c.bf16 %v1196_v27, %v1194_v26  ;;  %v1290_v10 = vld [vmem:[%s3744_s5 + $0x58] sm:$0xff]  ;;  %v1291_v22 = vld [vmem:[%s3744_s5 + $0x60] sm:$0xff]  ;;  %v1293_v23 = vld [vmem:[%s3744_s5 + $0x70] sm:$0xff] }
 0xba0   :  { %v1083_v39 = vsel %vm1077_vm1, %v3292_v59, %v1055_v25  ;;  %v3532_v25 = vpack.c.bf16 %v1293_v23, %v1291_v22 }
 0xba1   :  { %2647 = vmatpush1.bf16.msra.mxu0 %v2646_v37  ;;  %v1198_v37 = vld [vmem:[%s3742_s3 + $0x68] sm:$0xff] }
 0xba2   :  { %2649 = vmatprep.subr.bf16.mxu0 %v2648_v38  ;;  %v1200_v38 = vld [vmem:[%s3742_s3 + $0x78] sm:$0xff] }
 0xba3   :  { %v2668_v42 = vpack.c.bf16 %v1200_v38, %v1198_v37 }
 0xba5   :  { %2651 = vmatpush1.bf16.msra.mxu0 %v2650_v43  ;;  %v1197_v43 = vld [vmem:[%s3742_s3 + $0x60] sm:$0xff] }
 0xba6   :  { %2653 = vmatprep.subr.bf16.mxu0 %v2652_v44  ;;  %v1199_v44 = vld [vmem:[%s3742_s3 + $0x70] sm:$0xff] }
 0xba7   :  { %v2670_v45 = vpack.c.bf16 %v1199_v44, %v1197_v43  ;;  %v1310_v43 = vsub.s32 1, %v3201_v29 }
 0xba9   :  { %2655 = vmatpush1.bf16.msra.mxu0 %v2654_v47 }
 0xbac   :  { %2425 = vmatmul.mubr.msk.f32.vlgmr.msra.gmra.mrb[8].mxu0 %vm53_vm0, %v3280_v33 }
 0xbad   :  { %1178 = vmatprep.mubr.f32.mxu0 %v3046_v7 }
 0xc6f   :  { %v849_v48 = vpop.f32.mrb[6].mxu0 }
 0xc70   :  { %v851_v49 = vpop.f32.mrb[7].mxu0 }
 0xc71   :  { %v856_v50 = vcombine.low %v849_v48, %v851_v49  ;;  %v2421_v48 = vld [vmem:[%s3739_s0 + $0x1c] sm:$0xf] }
 0xc73   :  { %v863_v52 = vrot.slane %v856_v50, %v3204_v31 }
 0xc75   :  { %v865_v53 = vadd.f32 %v2417_v51, %v863_v52 }
 0xc77   :  { %876 = vrot.lane.b32.xlu1 %v865_v53, %s3048_s26  ;;  %v2419_v54 = vmul.f32 -1.442695, %v865_v53  ;;  %v873_v58 = vrot.slane %v865_v53, 2 }
 0xc79   :  { %2902 = vpow2.f32 %v2419_v54 }
 0xc7a   :  { %2904 = vtanh.f32 %v873_v58 }
 0xc7f   :  { %v3375_v56 = vpop.f32.mrb[8].mxu0 }
 0xc80   :  { %v3377_v57 = vpop.f32.mrb[9].mxu0 }
 0xc83   :  { %v2903_v60 = vpop.eup %2902 }
 0xc84   :  { %v869_v61 = vadd.f32 1.0, %v2903_v60  ;;  %v2905_v62 = vpop.eup %2904 }
 0xc86   :  { %2906 = vrcp.f32 %v869_v61 }
 0xc90   :  { %v2907_v8 = vpop.eup %2906 }
 0xc91   :  { %v887_v55 = vmul.f32 %v2907_v8, %v2905_v62  ;;  %v886_v9 = vmul.f32 %v2907_v8, %v3316_v3  ;;  %v1185_v3 = vld [vmem:[%s3742_s3] sm:$0xff]  ;;  %v1280_v8 = vld [vmem:[%s3744_s5 + $0x8] sm:$0xff] }
 0xc92   :  { %v2658_v17 = vpack.c.bf16 %v1187_v6, %v1185_v3  ;;  %v1288_v6 = vld [vmem:[%s3744_s5 + $0x48] sm:$0xff] }
 0xc93   :  { %889 = vrot.lane.b32.xlu0 %v887_v55, %s3048_s26  ;;  %v1282_v55 = vld [vmem:[%s3744_s5 + $0x18] sm:$0xff]  ;;  %v3504_v11 = vpack.c.bf16 %v1290_v10, %v1288_v6 }
 0xce9   :  { %v877_v0 = vpop.permute.xlu1 %876 }
 0xcea   :  { %v878_v1 = vrot.slane %v877_v0, 2 }
 0xcec   :  { %v2420_v2 = vmul.f32 -1.442695, %v878_v1  ;;  %v1284_v1 = vld [vmem:[%s3744_s5 + $0x28] sm:$0xff] }
 0xd05   :  { %v890_v14 = vpop.permute.xlu0 %889 }
 0xd06   :  { %v3387_v63 = vadd.f32 %v890_v14, %v886_v9  ;;  %v1279_v9 = vld [vmem:[%s3744_s5] sm:$0xff]  ;;  %v3466_v14 = vpack.c.bf16 %v1282_v55, %v1280_v8 }
 0xd07   :  { %v3471_v20 = vpack.c.bf16 %v1281_v15, %v1279_v9 }
 0xd08   :  { %2908 = vtanh.f32 %v3387_v63  ;;  %2673 = vmatprep.subr.bf16.mxu0 %v3466_v14 }
 0xd09   :  { %2910 = vpow2.f32 %v2420_v2  ;;  %2675 = vmatpush1.bf16.msra.mxu0 %v3471_v20  ;;  %v1286_v2 = vld [vmem:[%s3744_s5 + $0x38] sm:$0xff] }
 0xd12   :  { %v2909_v24 = vpop.eup %2908 }
 0xd13   :  { %895 = vrot.lane.b32.xlu0 %v2909_v24, %s3048_s26  ;;  %v2911_v4 = vpop.eup %2910 }
 0xd14   :  { %v883_v5 = vadd.f32 1.0, %v2911_v4  ;;  %v3484_v4 = vpack.c.bf16 %v1286_v2, %v1284_v1 }
 0xd16   :  { %2912 = vrcp.f32 %v883_v5  ;;  %v1283_v5 = vld [vmem:[%s3744_s5 + $0x20] sm:$0xff]  ;;  %2677 = vmatprep.subr.bf16.mxu0 %v3484_v4 }
 0xd20   :  { %v2913_v13 = vpop.eup %2912 }
 0xd85   :  { %v896_v16 = vpop.permute.xlu0 %895 }
 0xd86   :  { %v898_v18 = vmul.f32 %v2913_v13, %v896_v16  ;;  %v1289_v13 = vld [vmem:[%s3744_s5 + $0x50] sm:$0xff] }
 0xd87   :  { %v3512_v16 = vpack.c.bf16 %v1289_v13, %v1287_v12 }
 0xd88   :  { %v1063_v28 = vrot.slane %v898_v18, %v3204_v31  ;;  %2422 = vmatmul.mubr.msk.f32.vlgmr.msra.gmra.mrb[6].mxu1 %vm53_vm0, %v898_v18  ;;  %v1294_v18 = vld [vmem:[%s3744_s5 + $0x78] sm:$0xff] }
 0xd89   :  { %2659 = vmatpush1.bf16.msra.mxu1 %v2658_v17  ;;  %1265 = vmatprep.mubr.f32.mxu1 %v3046_v7  ;;  %v1292_v17 = vld [vmem:[%s3744_s5 + $0x68] sm:$0xff] }
 0xd8a   :  { %v1064_v32 = vcombine.low %v1063_v28, %v1063_v28  ;;  %2661 = vmatprep.subr.bf16.mxu1 %v2660_v19  ;;  %v3524_v19 = vpack.c.bf16 %v1294_v18, %v1292_v17 }
 0xd8c   :  { %v3436_v40 = vsel %vm1079_vm2, %v1083_v39, %v1064_v32 }
 0xd8d   :  { %2663 = vmatpush1.bf16.msra.mxu1 %v2662_v30 }
 0xd8e   :  { %2665 = vmatprep.subr.bf16.mxu1 %v2664_v34 }
 0xd91   :  { %2667 = vmatpush1.bf16.msra.mxu1 %v2666_v41 }
 0xd92   :  { %2669 = vmatprep.subr.bf16.mxu1 %v2668_v42 }
 0xd95   :  { %2671 = vmatpush1.bf16.msra.mxu1 %v2670_v45 }
 0xd96   :  { %2689 = vmatprep.subr.bf16.mxu1 %v3466_v14 }
 0xd98   :  { %2427 = vmatmul.mubr.msk.f32.vlgmr.msra.gmra.mrb[8].mxu1 %vm53_vm0, %v3280_v33 }
 0xd99   :  { %1271 = vmatprep.mubr.f32.mxu1 %v3046_v7  ;;  %2691 = vmatpush1.bf16.msra.mxu1 %v3471_v20 }
 0xd9a   :  { %2693 = vmatprep.subr.bf16.mxu1 %v3484_v4 }
 0xe5b   :  { %v970_v59 = vpop.f32.mrb[6].mxu1 }
 0xe5c   :  { %v972_v46 = vpop.f32.mrb[7].mxu1 }
 0xe5d   :  { %v977_v47 = vcombine.low %v970_v59, %v972_v46 }
 0xe5f   :  { %v984_v49 = vrot.slane %v977_v47, %v3204_v31 }
 0xe61   :  { %v986_v50 = vadd.f32 %v2421_v48, %v984_v49 }
 0xe63   :  { %997 = vrot.lane.b32.xlu0 %v986_v50, %s3048_s26  ;;  %v2423_v51 = vmul.f32 -1.442695, %v986_v50  ;;  %v994_v33 = vrot.slane %v986_v50, 2 }
 0xe65   :  { %2914 = vpow2.f32 %v2423_v51 }
 0xe66   :  { %2916 = vtanh.f32 %v994_v33 }
 0xe6b   :  { %v3452_v52 = vpop.f32.mrb[8].mxu1 }
 0xe6c   :  { %v3454_v53 = vpop.f32.mrb[9].mxu1  ;;  %v1750_v44 = vrot.slane %v3452_v52, 6  ;;  %v1862_v45 = vrot.slane %v3452_v52, 2 }
 0xe6d   :  { %v1751_v46 = vrot.slane %v3454_v53, 6  ;;  %v1863_v47 = vrot.slane %v3454_v53, 2 }
 0xe6f   :  { %v2915_v54 = vpop.eup %2914 }
 0xe70   :  { %v990_v58 = vadd.f32 1.0, %v2915_v54  ;;  %v2917_v60 = vpop.eup %2916 }
 0xe72   :  { %2918 = vrcp.f32 %v990_v58 }
 0xe7c   :  { %v2919_v61 = vpop.eup %2918 }
 0xe7d   :  { %v1008_v62 = vmul.f32 %v2919_v61, %v2917_v60  ;;  %v1007_v21 = vmul.f32 %v2919_v61, %v3387_v63  ;;  %v1285_v63 = vld [vmem:[%s3744_s5 + $0x30] sm:$0xff] }
 0xe7e   :  { %v3492_v3 = vpack.c.bf16 %v1285_v63, %v1283_v5 }
 0xe7f   :  { %1010 = vrot.lane.b32.xlu1 %v1008_v62, %s3048_s26 }
 0xe80   :  { %2679 = vmatpush1.bf16.msra.mxu0 %v3492_v3  ;;  %2695 = vmatpush1.bf16.msra.mxu1 %v3492_v3 }
 0xe81   :  { %2681 = vmatprep.subr.bf16.mxu0 %v3504_v11  ;;  %2697 = vmatprep.subr.bf16.mxu1 %v3504_v11 }
 0xe84   :  { %2683 = vmatpush1.bf16.msra.mxu0 %v3512_v16  ;;  %2699 = vmatpush1.bf16.msra.mxu1 %v3512_v16 }
 0xe85   :  { %2685 = vmatprep.subr.bf16.mxu0 %v3524_v19  ;;  %2701 = vmatprep.subr.bf16.mxu1 %v3524_v19 }
 0xe88   :  { %2687 = vmatpush1.bf16.msra.mxu0 %v3532_v25  ;;  %2703 = vmatpush1.bf16.msra.mxu1 %v3532_v25 }
 0xe89   :  { %2705 = vmatprep.subr.bf16.mxu0 %v3466_v14  ;;  %2721 = vmatprep.subr.bf16.mxu1 %v3466_v14 }
 0xed5   :  { %v998_v27 = vpop.permute.xlu0 %997 }
 0xed6   :  { %v999_v28 = vrot.slane %v998_v27, 2 }
 0xed8   :  { %v2424_v30 = vmul.f32 -1.442695, %v999_v28 }
 0xef1   :  { %v1011_v24 = vpop.permute.xlu1 %1010 }
 0xef2   :  { %v1013_v0 = vadd.f32 %v1011_v24, %v1007_v21 }
 0xef4   :  { %2920 = vtanh.f32 %v1013_v0 }
 0xef5   :  { %2922 = vpow2.f32 %v2424_v30 }
 0xefe   :  { %v2921_v26 = vpop.eup %2920 }
 0xeff   :  { %1016 = vrot.lane.b32.xlu1 %v2921_v26, %s3048_s26  ;;  %v2923_v32 = vpop.eup %2922 }
 0xf00   :  { %v1004_v34 = vadd.f32 1.0, %v2923_v32 }
 0xf02   :  { %2924 = vrcp.f32 %v1004_v34 }
 0xf0c   :  { %v2925_v35 = vpop.eup %2924 }
 0xf71   :  { %v1017_v36 = vpop.permute.xlu1 %1016 }
 0xf72   :  { %v1019_v37 = vmul.f32 %v2925_v35, %v1017_v36 }
 0xf74   :  { %v1067_v38 = vcombine.low %v1019_v37, %v1019_v37 }
 0xf76   :  { %v1074_v39 = vrot.slane %v1067_v38, %v3204_v31  ;;  %v1306_v31 = vsub.s32 0, %v3201_v29 }
 0xf78   :  { %v1075_v41 = vcombine.low %v1074_v39, %v1074_v39 }
 0xf7a   :  { %v1085_v42 = vsel %vm1081_vm3, %v3436_v40, %v1075_v41  ;;  %v1278_v40 = vld [vmem:[%s3743_s4] sm:$0x3] }
 0xf7b   :  { %2426 = vmatmul.mubr.msk.f32.gmra.mrb[10].mxu0 %vm53_vm0, %v1085_v42  ;;  %2428 = vmatmul.mubr.msk.f32.gmra.mrb[10].mxu1 %vm53_vm0, %v1085_v42  ;;  %v1307_v59 = vrot.slane %v1278_v40, %v1306_v31  ;;  %v1311_v50 = vrot.slane %v1278_v40, %v1310_v43 }
 0xf7c   :  { %1380 = vmatprep.mubr.f32.mxu0 %v3046_v7  ;;  %1488 = vmatprep.mubr.f32.mxu1 %v3046_v7 }
 0xf7f   :  { %1381 = vmatmul.mubr.f32.vlgmr.msra.gmra.mrb[12].mxu0 %v3046_v7 }
 0xf80   :  { %2707 = vmatpush1.bf16.msra.mxu0 %v3471_v20  ;;  %1598 = vmatprep.mubr.f32.mxu0 %v3046_v7 }
 0xf81   :  { %2709 = vmatprep.subr.bf16.mxu0 %v3484_v4 }
 0xf84   :  { %2711 = vmatpush1.bf16.msra.mxu0 %v3492_v3 }
 0xf85   :  { %2713 = vmatprep.subr.bf16.mxu0 %v3504_v11 }
 0xf88   :  { %2715 = vmatpush1.bf16.msra.mxu0 %v3512_v16 }
 0xf89   :  { %2717 = vmatprep.subr.bf16.mxu0 %v3524_v19 }
 0xf8c   :  { %2719 = vmatpush1.bf16.msra.mxu0 %v3532_v25 }
 0xf8d   :  { %2737 = vmatprep.subr.bf16.mxu0 %v3466_v14 }
0x104e   :  { %v1180_v48 = vpop.f32.mrb[10].mxu0  ;;  %v1273_v49 = vpop.f32.mrb[10].mxu1 }
0x104f   :  { %v1754_v51 = vadd.f32 %v1750_v44, %v1180_v48  ;;  %v1866_v33 = vadd.f32 %v1862_v45, %v1180_v48  ;;  %v1297_v54 = vrot.slane %v1273_v49, 6  ;;  %v1411_v58 = vrot.slane %v1273_v49, 2  ;;  %v1182_v60 = vpop.f32.mrb[11].mxu0  ;;  %v1275_v61 = vpop.f32.mrb[11].mxu1 }
0x1050   :  { %v1755_v62 = vadd.f32 %v1751_v46, %v1182_v60  ;;  %v1867_v29 = vadd.f32 %v1863_v47, %v1182_v60  ;;  %v1298_v8 = vrot.slane %v1275_v61, 6  ;;  %v1412_v55 = vrot.slane %v1275_v61, 2 }
0x1051   :  { %v3567_v9 = vadd.f32 %v1866_v33, %v1307_v59  ;;  %v1301_v52 = vadd.f32 %v1297_v54, %v3375_v56  ;;  %v1415_v15 = vadd.f32 %v1411_v58, %v3375_v56  ;;  %v3571_v53 = vadd.f32 %v1754_v51, %v1307_v59 }
0x1052   :  { %v3573_v21 = vadd.f32 %v1867_v29, %v1311_v50  ;;  %v1302_v24 = vadd.f32 %v1298_v8, %v3377_v57  ;;  %v1416_v0 = vadd.f32 %v1412_v55, %v3377_v57  ;;  %v1382_v1 = vpop.f32.mrb[12].mxu0  ;;  %v3577_v2 = vadd.f32 %v1755_v62, %v1311_v50 }
0x1053   :  { %v3579_v5 = vadd.f32 %v1307_v59, %v1301_v52  ;;  %v1384_v63 = vpop.f32.mrb[13].mxu0  ;;  %v3581_v6 = vadd.f32 %v1415_v15, %v1307_v59 }
0x1054   :  { %v3583_v10 = vadd.f32 %v1416_v0, %v1311_v50  ;;  %v3586_v13 = vadd.f32 %v1311_v50, %v1302_v24 }
0x1055   :  { %v1387_v56 = vadd.f32 %v1382_v1, %v3579_v5 }
0x1056   :  { %v1388_v17 = vadd.f32 %v1384_v63, %v3586_v13 }
0x1057   :  { %v2429_v12 = vmul.f32 -1.442695, %v1387_v56 }
0x1058   :  { %v2430_v27 = vmul.f32 -1.442695, %v1388_v17 }
0x1059   :  { %2926 = vpow2.f32 %v2429_v12 }
0x105a   :  { %2928 = vtanh.f32 %v1388_v17 }
0x1063   :  { %v2927_v18 = vpop.eup %2926 }
0x1064   :  { %v1392_v57 = vadd.f32 1.0, %v2927_v18  ;;  %v2929_v22 = vpop.eup %2928 }
0x1066   :  { %2930 = vrcp.f32 %v1392_v57 }
0x1067   :  { %2932 = vpow2.f32 %v2430_v27 }
0x1070   :  { %v2931_v23 = vpop.eup %2930 }
0x1071   :  { %v1403_v26 = vmul.f32 %v2931_v23, %v2929_v22  ;;  %v2933_v28 = vpop.eup %2932  ;;  %v1402_v32 = vmul.f32 0.0, %v2931_v23 }
0x1072   :  { %v1399_v30 = vadd.f32 1.0, %v2933_v28 }
0x1073   :  { %1405 = vrot.lane.b32.xlu0 %v1403_v26, %s3048_s26 }
0x1074   :  { %2934 = vrcp.f32 %v1399_v30 }
0x107e   :  { %v2935_v36 = vpop.eup %2934 }
0x10e5   :  { %v1406_v34 = vpop.permute.xlu0 %1405 }
0x10e6   :  { %v1408_v35 = vadd.f32 %v1406_v34, %v1402_v32 }
0x10e8   :  { %2936 = vtanh.f32 %v1408_v35  ;;  %v1517_v48 = vrot.slane %v1408_v35, 6 }
0x10f2   :  { %v2937_v37 = vpop.eup %2936 }
0x10f3   :  { %v1410_v38 = vmul.f32 %v2937_v37, %v2935_v36 }
0x10f5   :  { %1420 = vrot.lane.b32.xlu1 %v1410_v38, %s3048_s26 }
0x1167   :  { %v1421_v39 = vpop.permute.xlu1 %1420 }
0x1168   :  { %2431 = vmatmul.mubr.msk.f32.vlgmr.msra.gmra.mrb[12].mxu1 %vm53_vm0, %v1421_v39 }
0x1169   :  { %2723 = vmatpush1.bf16.msra.mxu1 %v3471_v20  ;;  %1708 = vmatprep.mubr.f32.mxu1 %v3046_v7 }
0x116a   :  { %2725 = vmatprep.subr.bf16.mxu1 %v3484_v4 }
0x116d   :  { %2727 = vmatpush1.bf16.msra.mxu1 %v3492_v3 }
0x116e   :  { %2729 = vmatprep.subr.bf16.mxu1 %v3504_v11 }
0x1171   :  { %2731 = vmatpush1.bf16.msra.mxu1 %v3512_v16 }
0x1172   :  { %2733 = vmatprep.subr.bf16.mxu1 %v3524_v19 }
0x1175   :  { %2735 = vmatpush1.bf16.msra.mxu1 %v3532_v25 }
0x1176   :  { %2753 = vmatprep.subr.bf16.mxu1 %v3466_v14 }
0x123b   :  { %v1490_v41 = vpop.f32.mrb[12].mxu1 }
0x123c   :  { %v1497_v42 = vrot.slane %v1490_v41, 6  ;;  %v1492_v31 = vpop.f32.mrb[13].mxu1 }
0x123d   :  { %v1498_v44 = vrot.slane %v1492_v31, 6 }
0x123e   :  { %v1501_v40 = vadd.f32 %v1497_v42, %v3581_v6 }
0x123f   :  { %v1502_v45 = vadd.f32 %v1498_v44, %v3583_v10 }
0x1240   :  { %v2432_v43 = vmul.f32 -1.442695, %v1501_v40 }
0x1241   :  { %v2433_v33 = vmul.f32 -1.442695, %v1502_v45 }
0x1242   :  { %2938 = vpow2.f32 %v2432_v43 }
0x1243   :  { %2940 = vtanh.f32 %v1502_v45 }
0x124c   :  { %v2939_v59 = vpop.eup %2938 }
0x124d   :  { %v1506_v46 = vadd.f32 1.0, %v2939_v59  ;;  %v2941_v47 = vpop.eup %2940 }
0x124f   :  { %2942 = vrcp.f32 %v1506_v46 }
0x1250   :  { %2944 = vpow2.f32 %v2433_v33 }
0x1259   :  { %v2943_v49 = vpop.eup %2942 }
0x125a   :  { %v1520_v50 = vmul.f32 %v2943_v49, %v2941_v47  ;;  %v1519_v51 = vmul.f32 %v2943_v49, %v1517_v48  ;;  %v2945_v54 = vpop.eup %2944 }
0x125b   :  { %v1513_v58 = vadd.f32 1.0, %v2945_v54 }
0x125c   :  { %1522 = vrot.lane.b32.xlu0 %v1520_v50, %s3048_s26 }
0x125d   :  { %2946 = vrcp.f32 %v1513_v58 }
0x1267   :  { %v2947_v62 = vpop.eup %2946 }
0x12ce   :  { %v1523_v60 = vpop.permute.xlu0 %1522 }
0x12cf   :  { %v1525_v61 = vadd.f32 %v1523_v60, %v1519_v51 }
0x12d1   :  { %2948 = vtanh.f32 %v1525_v61  ;;  %v1627_v22 = vrot.slane %v1525_v61, 6 }
0x12db   :  { %v2949_v29 = vpop.eup %2948 }
0x12dc   :  { %v1527_v8 = vmul.f32 %v2949_v29, %v2947_v62 }
0x12de   :  { %v1529_v55 = vrot.slane %v1527_v8, 2 }
0x12e0   :  { %1530 = vrot.lane.b32.xlu1 %v1529_v55, %s3048_s26 }
0x1352   :  { %v1531_v52 = vpop.permute.xlu1 %1530 }
0x1353   :  { %2434 = vmatmul.mubr.msk.f32.vlgmr.msra.gmra.mrb[14].mxu0 %vm53_vm0, %v1531_v52 }
0x1354   :  { %2739 = vmatpush1.bf16.msra.mxu0 %v3471_v20  ;;  %1828 = vmatprep.mubr.f32.mxu0 %v3046_v7 }
0x1355   :  { %2741 = vmatprep.subr.bf16.mxu0 %v3484_v4 }
0x1358   :  { %2743 = vmatpush1.bf16.msra.mxu0 %v3492_v3 }
0x1359   :  { %2745 = vmatprep.subr.bf16.mxu0 %v3504_v11 }
0x135c   :  { %2747 = vmatpush1.bf16.msra.mxu0 %v3512_v16 }
0x135d   :  { %2749 = vmatprep.subr.bf16.mxu0 %v3524_v19 }
0x1360   :  { %2751 = vmatpush1.bf16.msra.mxu0 %v3532_v25 }
0x1361   :  { %2769 = vmatprep.subr.bf16.mxu0 %v3466_v14 }
0x1426   :  { %v1600_v15 = vpop.f32.mrb[14].mxu0 }
0x1427   :  { %v1607_v24 = vrot.slane %v1600_v15, 4  ;;  %v1602_v0 = vpop.f32.mrb[15].mxu0 }
0x1428   :  { %v1608_v56 = vrot.slane %v1602_v0, 4 }
0x1429   :  { %v1611_v1 = vadd.f32 %v1607_v24, %v3579_v5 }
0x142a   :  { %v1612_v12 = vadd.f32 %v1608_v56, %v3586_v13 }
0x142b   :  { %v2435_v63 = vmul.f32 -1.442695, %v1611_v1 }
0x142c   :  { %v2436_v28 = vmul.f32 -1.442695, %v1612_v12 }
0x142d   :  { %2950 = vpow2.f32 %v2435_v63 }
0x142e   :  { %2952 = vtanh.f32 %v1612_v12 }
0x1437   :  { %v2951_v17 = vpop.eup %2950 }
0x1438   :  { %v1616_v18 = vadd.f32 1.0, %v2951_v17  ;;  %v2953_v57 = vpop.eup %2952 }
0x143a   :  { %2954 = vrcp.f32 %v1616_v18 }
0x143b   :  { %2956 = vpow2.f32 %v2436_v28 }
0x1444   :  { %v2955_v23 = vpop.eup %2954 }
0x1445   :  { %v1630_v26 = vmul.f32 %v2955_v23, %v2953_v57  ;;  %v1629_v27 = vmul.f32 %v2955_v23, %v1627_v22  ;;  %v2957_v30 = vpop.eup %2956 }
0x1446   :  { %v1623_v5 = vadd.f32 1.0, %v2957_v30 }
0x1447   :  { %1632 = vrot.lane.b32.xlu0 %v1630_v26, %s3048_s26 }
0x1448   :  { %2958 = vrcp.f32 %v1623_v5 }
0x1452   :  { %v2959_v13 = vpop.eup %2958 }
0x14b9   :  { %v1633_v32 = vpop.permute.xlu0 %1632 }
0x14ba   :  { %v1635_v34 = vadd.f32 %v1633_v32, %v1629_v27 }
0x14bc   :  { %2960 = vtanh.f32 %v1635_v34  ;;  %v1737_v47 = vrot.slane %v1635_v34, 6 }
0x14c6   :  { %v2961_v35 = vpop.eup %2960 }
0x14c7   :  { %v1637_v36 = vmul.f32 %v2961_v35, %v2959_v13 }
0x14c9   :  { %v1639_v37 = vrot.slane %v1637_v36, 4 }
0x14cb   :  { %1640 = vrot.lane.b32.xlu1 %v1639_v37, %s3048_s26 }
0x153d   :  { %v1641_v38 = vpop.permute.xlu1 %1640 }
0x153e   :  { %2437 = vmatmul.mubr.msk.f32.vlgmr.msra.gmra.mrb[14].mxu1 %vm53_vm0, %v1641_v38 }
0x153f   :  { %2755 = vmatpush1.bf16.msra.mxu1 %v3471_v20  ;;  %1939 = vmatprep.mubr.f32.mxu1 %v3046_v7 }
0x1540   :  { %2757 = vmatprep.subr.bf16.mxu1 %v3484_v4 }
0x1543   :  { %2759 = vmatpush1.bf16.msra.mxu1 %v3492_v3 }
0x1544   :  { %2761 = vmatprep.subr.bf16.mxu1 %v3504_v11 }
0x1547   :  { %2763 = vmatpush1.bf16.msra.mxu1 %v3512_v16 }
0x1548   :  { %2765 = vmatprep.subr.bf16.mxu1 %v3524_v19 }
0x154b   :  { %2767 = vmatpush1.bf16.msra.mxu1 %v3532_v25 }
0x154c   :  { %2785 = vmatprep.subr.bf16.mxu1 %v3466_v14 }
0x1611   :  { %v1710_v39 = vpop.f32.mrb[14].mxu1 }
0x1612   :  { %v1717_v41 = vrot.slane %v1710_v39, 2  ;;  %v1712_v42 = vpop.f32.mrb[15].mxu1 }
0x1613   :  { %v1718_v43 = vrot.slane %v1712_v42, 2 }
0x1614   :  { %v1721_v31 = vadd.f32 %v1717_v41, %v3581_v6 }
0x1615   :  { %v1722_v44 = vadd.f32 %v1718_v43, %v3583_v10 }
0x1616   :  { %v2438_v40 = vmul.f32 -1.442695, %v1721_v31 }
0x1617   :  { %v2439_v14 = vmul.f32 -1.442695, %v1722_v44 }
0x1618   :  { %2962 = vpow2.f32 %v2438_v40 }
0x1619   :  { %2964 = vtanh.f32 %v1722_v44 }
0x1622   :  { %v2963_v45 = vpop.eup %2962 }
0x1623   :  { %v1726_v59 = vadd.f32 1.0, %v2963_v45  ;;  %v2965_v46 = vpop.eup %2964 }
0x1625   :  { %2966 = vrcp.f32 %v1726_v59 }
0x1626   :  { %2968 = vpow2.f32 %v2439_v14 }
0x162f   :  { %v2967_v48 = vpop.eup %2966 }
0x1630   :  { %v1740_v49 = vmul.f32 %v2967_v48, %v2965_v46  ;;  %v1739_v50 = vmul.f32 %v2967_v48, %v1737_v47  ;;  %v2969_v51 = vpop.eup %2968 }
0x1631   :  { %v1733_v6 = vadd.f32 1.0, %v2969_v51 }
0x1632   :  { %1742 = vrot.lane.b32.xlu0 %v1740_v49, %s3048_s26 }
0x1633   :  { %2970 = vrcp.f32 %v1733_v6 }
0x163d   :  { %v2971_v10 = vpop.eup %2970 }
0x16a4   :  { %v1743_v33 = vpop.permute.xlu0 %1742 }
0x16a5   :  { %v1745_v54 = vadd.f32 %v1743_v33, %v1739_v50 }
0x16a7   :  { %2972 = vtanh.f32 %v1745_v54  ;;  %v1851_v63 = vrot.slane %v1745_v54, 6 }
0x16b1   :  { %v2973_v58 = vpop.eup %2972 }
0x16b2   :  { %v1747_v60 = vmul.f32 %v2973_v58, %v2971_v10 }
0x16b4   :  { %v1759_v61 = vrot.slane %v1747_v60, 6 }
0x16b6   :  { %1760 = vrot.lane.b32.xlu1 %v1759_v61, %s3048_s26 }
0x1728   :  { %v1761_v62 = vpop.permute.xlu1 %1760 }
0x1729   :  { %2440 = vmatmul.mubr.msk.f32.vlgmr.msra.gmra.mrb[16].mxu0 %vm53_vm0, %v1761_v62 }
0x172a   :  { %2771 = vmatpush1.bf16.msra.mxu0 %v3471_v20  ;;  %2049 = vmatprep.mubr.f32.mxu0 %v3046_v7 }
0x172b   :  { %2773 = vmatprep.subr.bf16.mxu0 %v3484_v4 }
0x172e   :  { %2775 = vmatpush1.bf16.msra.mxu0 %v3492_v3 }
0x172f   :  { %2777 = vmatprep.subr.bf16.mxu0 %v3504_v11 }
0x1732   :  { %2779 = vmatpush1.bf16.msra.mxu0 %v3512_v16 }
0x1733   :  { %2781 = vmatprep.subr.bf16.mxu0 %v3524_v19 }
0x1736   :  { %2783 = vmatpush1.bf16.msra.mxu0 %v3532_v25 }
0x17fc   :  { %v1830_v29 = vpop.f32.mrb[16].mxu0 }
0x17fd   :  { %v1835_v8 = vadd.f32 %v1830_v29, %v3571_v53  ;;  %v1832_v55 = vpop.f32.mrb[17].mxu0 }
0x17fe   :  { %v1836_v15 = vadd.f32 %v1832_v55, %v3577_v2 }
0x17ff   :  { %v2441_v52 = vmul.f32 -1.442695, %v1835_v8 }
0x1800   :  { %v2442_v18 = vmul.f32 -1.442695, %v1836_v15 }
0x1801   :  { %2974 = vpow2.f32 %v2441_v52 }
0x1802   :  { %2976 = vtanh.f32 %v1836_v15 }
0x180b   :  { %v2975_v24 = vpop.eup %2974 }
0x180c   :  { %v1840_v0 = vadd.f32 1.0, %v2975_v24  ;;  %v2977_v1 = vpop.eup %2976 }
0x180e   :  { %2978 = vrcp.f32 %v1840_v0 }
0x180f   :  { %2980 = vpow2.f32 %v2442_v18 }
0x1818   :  { %v2979_v56 = vpop.eup %2978 }
0x1819   :  { %v1854_v12 = vmul.f32 %v2979_v56, %v2977_v1  ;;  %v1853_v17 = vmul.f32 %v2979_v56, %v1851_v63  ;;  %v2981_v57 = vpop.eup %2980 }
0x181a   :  { %v1847_v22 = vadd.f32 1.0, %v2981_v57 }
0x181b   :  { %1856 = vrot.lane.b32.xlu0 %v1854_v12, %s3048_s26 }
0x181c   :  { %2982 = vrcp.f32 %v1847_v22 }
0x1826   :  { %v2983_v27 = vpop.eup %2982 }
0x188d   :  { %v1857_v23 = vpop.permute.xlu0 %1856 }
0x188e   :  { %v1859_v26 = vadd.f32 %v1857_v23, %v1853_v17 }
0x1890   :  { %2984 = vtanh.f32 %v1859_v26 }
0x189a   :  { %v2985_v28 = vpop.eup %2984 }
0x189b   :  { %v1861_v30 = vmul.f32 %v2985_v28, %v2983_v27 }
0x189d   :  { %1871 = vrot.lane.b32.xlu1 %v1861_v30, %s3048_s26 }
0x190f   :  { %v1872_v5 = vpop.permute.xlu1 %1871 }
0x1910   :  { %2443 = vmatmul.mubr.msk.f32.vlgmr.msra.gmra.mrb[16].mxu1 %vm53_vm0, %v1872_v5 }
0x1911   :  { %2787 = vmatpush1.bf16.msra.mxu1 %v3471_v20  ;;  %2159 = vmatprep.mubr.f32.mxu1 %v3046_v7 }
0x1912   :  { %2789 = vmatprep.subr.bf16.mxu1 %v3484_v4 }
0x1915   :  { %2791 = vmatpush1.bf16.msra.mxu1 %v3492_v3 }
0x1916   :  { %2793 = vmatprep.subr.bf16.mxu1 %v3504_v11 }
0x1919   :  { %2795 = vmatpush1.bf16.msra.mxu1 %v3512_v16  ;;  %v1968_v16 = vrot.slane %v1859_v26, 6 }
0x191a   :  { %2797 = vmatprep.subr.bf16.mxu1 %v3524_v19 }
0x191d   :  { %2799 = vmatpush1.bf16.msra.mxu1 %v3532_v25 }
0x19e3   :  { %v1941_v32 = vpop.f32.mrb[16].mxu1 }
0x19e4   :  { %v1948_v34 = vrot.slane %v1941_v32, 6  ;;  %v1943_v13 = vpop.f32.mrb[17].mxu1 }
0x19e5   :  { %v1949_v36 = vrot.slane %v1943_v13, 6  ;;  %v3049_v13 = vmov 0.0|0.0  }
0x19e6   :  { %v1952_v35 = vadd.f32 %v1948_v34, %v3567_v9  ;;  %v2200_v34 = vld [vmem:[%s3745_s6 + $0x8] sm:$0xff]  ;;  %2800 = vmatprep.subr.bf16.mxu0 %v3049_v13  ;;  %2812 = vmatprep.subr.bf16.mxu1 %v3049_v13 }
0x19e7   :  { %v1953_v4 = vadd.f32 %v1949_v36, %v3573_v21 }
0x19e8   :  { %v2444_v20 = vmul.f32 -1.442695, %v1952_v35 }
0x19e9   :  { %v2445_v25 = vmul.f32 -1.442695, %v1953_v4 }
0x19ea   :  { %2986 = vpow2.f32 %v2444_v20  ;;  %v2202_v20 = vld [vmem:[%s3745_s6 + $0x18] sm:$0xff] }
0x19eb   :  { %2988 = vtanh.f32 %v1953_v4  ;;  %v2203_v4 = vld [vmem:[%s3745_s6 + $0x20] sm:$0xff] }
0x19f4   :  { %v2987_v37 = vpop.eup %2986 }
0x19f5   :  { %v1957_v3 = vadd.f32 1.0, %v2987_v37  ;;  %v2989_v11 = vpop.eup %2988  ;;  %v2204_v37 = vld [vmem:[%s3745_s6 + $0x28] sm:$0xff] }
0x19f7   :  { %2990 = vrcp.f32 %v1957_v3  ;;  %v2807_v3 = vpack.c.bf16 %v2204_v37, %v2203_v4 }
0x19f8   :  { %2992 = vpow2.f32 %v2445_v25 }
0x1a01   :  { %v2991_v38 = vpop.eup %2990 }
0x1a02   :  { %v1971_v19 = vmul.f32 %v2991_v38, %v2989_v11  ;;  %v1970_v39 = vmul.f32 %v2991_v38, %v1968_v16  ;;  %v2993_v41 = vpop.eup %2992  ;;  %v2205_v11 = vld [vmem:[%s3745_s6 + $0x30] sm:$0xff] }
0x1a03   :  { %v1964_v42 = vadd.f32 1.0, %v2993_v41 }
0x1a04   :  { %1973 = vrot.lane.b32.xlu0 %v1971_v19, %s3048_s26 }
0x1a05   :  { %2994 = vrcp.f32 %v1964_v42  ;;  %v2291_v42 = vld [vmem:[%s3747_s8] sm:$0xff] }
0x1a0f   :  { %v2995_v43 = vpop.eup %2994 }
0x1a76   :  { %v1974_v31 = vpop.permute.xlu0 %1973 }
0x1a77   :  { %v1976_v40 = vadd.f32 %v1974_v31, %v1970_v39  ;;  %v2292_v31 = vld [vmem:[%s3747_s8 + $0x8] sm:$0xff] }
0x1a79   :  { %2996 = vtanh.f32 %v1976_v40  ;;  %v2078_v58 = vrot.slane %v1976_v40, 6  ;;  %v2293_v40 = vld [vmem:[%s3747_s8 + $0x10] sm:$0xff] }
0x1a83   :  { %v2997_v44 = vpop.eup %2996 }
0x1a84   :  { %v1978_v45 = vmul.f32 %v2997_v44, %v2995_v43  ;;  %v2813_v43 = vpack.c.bf16 %v2292_v31, %v2291_v42  ;;  %v2294_v44 = vld [vmem:[%s3747_s8 + $0x18] sm:$0xff] }
0x1a86   :  { %v1980_v59 = vrot.slane %v1978_v45, 2  ;;  %v2816_v45 = vpack.c.bf16 %v2294_v44, %v2293_v40 }
0x1a88   :  { %1981 = vrot.lane.b32.xlu1 %v1980_v59, %s3048_s26  ;;  %v2295_v59 = vld [vmem:[%s3747_s8 + $0x20] sm:$0xff] }
0x1afa   :  { %v1982_v46 = vpop.permute.xlu1 %1981 }
0x1afb   :  { %2446 = vmatmul.mubr.msk.f32.vlgmr.msra.gmra.mrb[18].mxu0 %vm53_vm0, %v1982_v46  ;;  %v2296_v46 = vld [vmem:[%s3747_s8 + $0x28] sm:$0xff] }
0x1afc   :  { %2490 = vmatprep.mubr.msk.f32.mxu0 %vm3050_vm4, %v3046_v7 }
0x1bce   :  { %v2051_v47 = vpop.f32.mrb[18].mxu0 }
0x1bcf   :  { %v2058_v48 = vrot.slane %v2051_v47, 4  ;;  %v2053_v49 = vpop.f32.mrb[19].mxu0 }
0x1bd0   :  { %v2059_v51 = vrot.slane %v2053_v49, 4 }
0x1bd1   :  { %v2062_v50 = vadd.f32 %v2058_v48, %v3571_v53  ;;  %v2819_v48 = vpack.c.bf16 %v2296_v46, %v2295_v59 }
0x1bd2   :  { %v2063_v6 = vadd.f32 %v2059_v51, %v3577_v2 }
0x1bd3   :  { %v2447_v14 = vmul.f32 -1.442695, %v2062_v50 }
0x1bd4   :  { %v2448_v29 = vmul.f32 -1.442695, %v2063_v6 }
0x1bd5   :  { %2998 = vpow2.f32 %v2447_v14 }
0x1bd6   :  { %3000 = vtanh.f32 %v2063_v6  ;;  %v2297_v6 = vld [vmem:[%s3747_s8 + $0x30] sm:$0xff] }
0x1bdf   :  { %v2999_v33 = vpop.eup %2998 }
0x1be0   :  { %v2067_v54 = vadd.f32 1.0, %v2999_v33  ;;  %v3001_v10 = vpop.eup %3000  ;;  %v2298_v33 = vld [vmem:[%s3747_s8 + $0x38] sm:$0xff]  ;;  %s3022_s8 = scalar_lea.vmem %s2388_s19, 32 }
0x1be1   :  { %p3023_p0 = scmp.ne.s32.totalorder %s2388_s19, %s3022_s8  ;;  %p3028_p2 = scmp.lt.s32.totalorder %s3022_s8, %s3022_s8 }
0x1be2   :  { %3002 = vrcp.f32 %v2067_v54  ;;  %v2822_v54 = vpack.c.bf16 %v2298_v33, %v2297_v6 }
0x1be3   :  { %3004 = vpow2.f32 %v2448_v29  ;;  %v2454_v29 = vld [vmem:[%s3748_s9] ss:$0 sm:$0xff]  ;;  %p3029_p3 = por %p3028_p2, %p3027_p1 }
0x1be5   :  { %p3030_p4 = pnand %p3029_p3, %p3023_p0 }
0x1bec   :  { %v3003_v60 = vpop.eup %3002 }
0x1bed   :  { %v2081_v61 = vmul.f32 %v3003_v60, %v3001_v10  ;;  %v2080_v62 = vmul.f32 %v3003_v60, %v2078_v58  ;;  %v3005_v8 = vpop.eup %3004  ;;  %v2452_v10 = vld [vmem:[%s3746_s7] ss:$0 sm:$0xff] }
0x1bee   :  { %v2074_v53 = vadd.f32 1.0, %v3005_v8 }
0x1bef   :  { %2083 = vrot.lane.b32.xlu0 %v2081_v61, %s3048_s26 }
0x1bf0   :  { %3006 = vrcp.f32 %v2074_v53 }
0x1bfa   :  { %v3007_v2 = vpop.eup %3006 }
0x1c61   :  { %v2084_v55 = vpop.permute.xlu0 %2083 }
0x1c62   :  { %v2086_v52 = vadd.f32 %v2084_v55, %v2080_v62 }
0x1c64   :  { %3008 = vtanh.f32 %v2086_v52  ;;  %v2188_v28 = vrot.slane %v2086_v52, 6 }
0x1c6e   :  { %v3009_v15 = vpop.eup %3008 }
0x1c6f   :  { %v2088_v24 = vmul.f32 %v3009_v15, %v3007_v2 }
0x1c71   :  { %v2090_v0 = vrot.slane %v2088_v24, 4 }
0x1c73   :  { %2091 = vrot.lane.b32.xlu1 %v2090_v0, %s3048_s26 }
0x1ce5   :  { %v2092_v1 = vpop.permute.xlu1 %2091 }
0x1ce6   :  { %2449 = vmatmul.mubr.msk.f32.vlgmr.msra.gmra.mrb[18].mxu1 %vm53_vm0, %v2092_v1 }
0x1ce7   :  { %2509 = vmatprep.mubr.msk.f32.mxu1 %vm3050_vm4, %v3046_v7  ;;  %v2206_v7 = vld [vmem:[%s3745_s6 + $0x38] sm:$0xff]  ;;  %2814 = vmatpush3.bf16.msra.mxu1 %v2813_v43 }
0x1ce8   :  { %v2810_v16 = vpack.c.bf16 %v2206_v7, %v2205_v11  ;;  %2815 = vmatprep.subr.bf16.mxu1 %v3049_v13 }
0x1ceb   :  { %2817 = vmatpush3.bf16.msra.mxu1 %v2816_v45 }
0x1cec   :  { %2818 = vmatprep.subr.bf16.mxu1 %v3049_v13 }
0x1cef   :  { %2820 = vmatpush3.bf16.msra.mxu1 %v2819_v48 }
0x1cf0   :  { %2821 = vmatprep.subr.bf16.mxu1 %v3049_v13 }
0x1cf3   :  { %2823 = vmatpush3.bf16.msra.mxu1 %v2822_v54 }
0x1db9   :  { %v2161_v63 = vpop.f32.mrb[18].mxu1 }
0x1dba   :  { %v2168_v56 = vrot.slane %v2161_v63, 2  ;;  %v2163_v12 = vpop.f32.mrb[19].mxu1 }
0x1dbb   :  { %v2169_v57 = vrot.slane %v2163_v12, 2 }
0x1dbc   :  { %v2172_v17 = vadd.f32 %v2168_v56, %v3567_v9  ;;  %v2199_v9 = vld [vmem:[%s3745_s6] sm:$0xff] }
0x1dbd   :  { %v2173_v22 = vadd.f32 %v2169_v57, %v3573_v21  ;;  %v2201_v21 = vld [vmem:[%s3745_s6 + $0x10] sm:$0xff]  ;;  %v2801_v35 = vpack.c.bf16 %v2200_v34, %v2199_v9 }
0x1dbe   :  { %v2450_v18 = vmul.f32 -1.442695, %v2172_v17  ;;  %v2804_v36 = vpack.c.bf16 %v2202_v20, %v2201_v21 }
0x1dbf   :  { %2802 = vmatpush3.bf16.msra.mxu0 %v2801_v35  ;;  %v2451_v38 = vmul.f32 -1.442695, %v2173_v22 }
0x1dc0   :  { %3010 = vpow2.f32 %v2450_v18  ;;  %2803 = vmatprep.subr.bf16.mxu0 %v3049_v13 }
0x1dc1   :  { %3012 = vtanh.f32 %v2173_v22 }
0x1dc3   :  { %2805 = vmatpush3.bf16.msra.mxu0 %v2804_v36 }
0x1dc4   :  { %2806 = vmatprep.subr.bf16.mxu0 %v3049_v13 }
0x1dc7   :  { %2808 = vmatpush3.bf16.msra.mxu0 %v2807_v3 }
0x1dc8   :  { %2809 = vmatprep.subr.bf16.mxu0 %v3049_v13 }
0x1dca   :  { %v3011_v23 = vpop.eup %3010 }
0x1dcb   :  { %v2177_v26 = vadd.f32 1.0, %v3011_v23  ;;  %v3013_v27 = vpop.eup %3012  ;;  %2811 = vmatpush3.bf16.msra.mxu0 %v2810_v16 }
0x1dcd   :  { %3014 = vrcp.f32 %v2177_v26 }
0x1dce   :  { %3016 = vpow2.f32 %v2451_v38 }
0x1dd7   :  { %v3015_v30 = vpop.eup %3014 }
0x1dd8   :  { %v2191_v5 = vmul.f32 %v3015_v30, %v3013_v27  ;;  %v2190_v32 = vmul.f32 %v3015_v30, %v2188_v28  ;;  %v3017_v19 = vpop.eup %3016 }
0x1dd9   :  { %v2184_v39 = vadd.f32 1.0, %v3017_v19 }
0x1dda   :  { %2193 = vrot.lane.b32.xlu0 %v2191_v5, %s3048_s26 }
0x1ddb   :  { %3018 = vrcp.f32 %v2184_v39 }
0x1de5   :  { %v3019_v47 = vpop.eup %3018 }
0x1e4c   :  { %v2194_v25 = vpop.permute.xlu0 %2193 }
0x1e4d   :  { %v2196_v41 = vadd.f32 %v2194_v25, %v2190_v32 }
0x1e4f   :  { %3020 = vtanh.f32 %v2196_v41 }
0x1e59   :  { %v3021_v49 = vpop.eup %3020 }
0x1e5a   :  { %v2198_v50 = vmul.f32 %v3021_v49, %v3019_v47 }
0x1e5c   :  { %v2215_v14 = vrot.slane %v2198_v50, 6 }
0x1e5e   :  { %2216 = vrot.lane.b32.xlu1 %v2215_v14, %s3048_s26 }
0x1ed0   :  { %v2217_v51 = vpop.permute.xlu1 %2216 }
0x1ed1   :  { %2491 = vmatmul.mubr.msk.f32.vlgmr.msra.gmra.mrb[20].mxu0 %vm53_vm0, %v2217_v51 }
0x1fa4   :  { %v2286_v58 = vpop.f32.mrb[20].mxu0 }
0x1fa5   :  { %v2287_v60 = vadd.f32 %v2452_v10, %v2286_v58  ;;  %v2492_v61 = vpop.f32.mrb[21].mxu0 }
0x1fa7   :  { %v2290_v62 = vmax.f32 %v2287_v60, 0.0 }
0x1fa9   :  { %2510 = vmatmul.mubr.msk.f32.vlgmr.msra.gmra.mrb[20].mxu1 %vm53_vm0, %v2290_v62 }
0x207c   :  { %v2375_v8 = vpop.f32.mrb[20].mxu1 }
0x207d   :  { %v2376_v53 = vadd.f32 %v2454_v29, %v2375_v8  ;;  %v2511_v55 = vpop.f32.mrb[21].mxu1 }
0x207f   :  { %2380 = vst.msk [vmem:[#allocation2] sm:$0x3] %vm2379_vm5, %v2376_v53 }
0x2080   :  { %3033 = shalt.err (!%p3030_p4)
}
0x2081   :  { %s3034_s21 = scalar_lea.hbm %s3749_s10, 32 }
0x2082   :  { %p3035_p5 = scmp.ne.s32.totalorder %s3749_s10, %s3034_s21  ;;  %p3038_p6 = scmp.lt.u32.totalorder %s3034_s21, %s3749_s10 }
0x2084   :  { %p3040_p7 = pnand %p3038_p6, %p3035_p5 }
0x2086   :  { %3043 = shalt.err (!%p3040_p7)
}
0x2087   :  { %2390 = dma.vmem_to_hbm [thread:$0]  %s2388_s19, 32, %s3749_s10, [#allocation3]  }
0x2088   :  { %3044 = dma.done.wait [#allocation3], 32  }
0x2089   :  { %3045 = vsyncadd [#allocation3], 4294967264 }
0x208a   :  { %2394 = vsyncpa [#allocation3], 1 }

</bundles_post_ra>
